<compile_context>
chip_gen: v7x
topology: tpu7x:2x2x1
jax: 0.10.0
libtpu: 0.0.40
codegen_flags: <defaults>
</compile_context>

<pallas_src>
import jax
import jax.numpy as jnp
import numpy as np
from jax.experimental import pallas as pl
from jax.experimental.pallas import tpu as pltpu


def _round_up(x, m):
    return ((x + m - 1) // m) * m


def _round_down_128(x):
    return max(128, (x // 128) * 128)


def _tile_vmem_bytes(tile, nb, heads, esize):
    qk = 4 * 2 * (3 * nb) * tile * esize      # q, k, qo, ko tiles, double-buffered
    ang = 2 * 2 * tile * 4                    # lat/lon tiles, double-buffered (f32)
    frq = 2 * heads * nb * 4                  # resident frequency tables
    tmp = 20 * nb * tile * 4                  # generous f32 intermediate estimate
    return qk + ang + frq + tmp


def _tpu_budget():
    """Returns (VMEM byte budget, TensorCores per chip), generation-aware."""
    vmem_cap = 64 * 1024 * 1024               # assume v7x (smallest VMEM) on failure
    num_cores = 2
    try:
        info = pltpu.get_tpu_info()
        vmem_cap = int(getattr(info, "vmem_capacity_bytes", vmem_cap))
        for name in ("num_cores", "num_tensorcores", "tensorcores_per_chip",
                     "core_count"):
            if hasattr(info, name):
                num_cores = int(getattr(info, name))
                break
    except Exception:
        pass
    # leave headroom under the physical capacity; never ask for more than 96 MiB
    budget = min((vmem_cap * 3) // 4, 96 * 1024 * 1024)
    return budget, max(1, num_cores)


def spherical_rope_kernel(lat_ref, lon_ref, flon_ref, flat_ref,
                          q_ref, k_ref, qo_ref, ko_ref):
    # lat/lon tiles: (1, tile) f32; freq tables: (heads, nb, 1) f32 (resident);
    # q/k tiles: (1, 3*nb, tile) in the I/O dtype.
    h = pl.program_id(1)
    nb = flon_ref.shape[1]

    lon = lon_ref[...]                 # (1, tile) f32
    lat = lat_ref[...]                 # (1, tile) f32
    flon = flon_ref[h]                 # (nb, 1) f32 (scale already folded in)
    flat = flat_ref[h]                 # (nb, 1) f32

    # phase angles + trig in float32, broadcast to (nb, tile)
    cos_lon = jnp.cos(lon * flon)
    sin_lon = jnp.sin(lon * flon)
    cos_lat = jnp.cos(lat * flat)
    sin_lat = jnp.sin(lat * flat)

    def rotate(x_ref, o_ref):
        # load the full slab once, cast to f32, then slice the value (keeps
        # sub-32-bit packed layouts from forcing per-slice sublane copies)
        x = x_ref[0].astype(jnp.float32)          # (3*nb, tile)
        x0 = x[0 * nb:1 * nb, :]
        x1 = x[1 * nb:2 * nb, :]
        x2 = x[2 * nb:3 * nb, :]
        # factored 2-stage rotation:
        #   o0 = cA*x0 - sA*(cB*x1 - sB*x2)
        #   o1 = sA*x0 + cA*(cB*x1 - sB*x2)
        #   o2 = sB*x1 + cB*x2
        t = cos_lat * x1 - sin_lat * x2
        o2 = sin_lat * x1 + cos_lat * x2
        o0 = cos_lon * x0 - sin_lon * t
        o1 = sin_lon * x0 + cos_lon * t
        o_ref[0, 0 * nb:1 * nb, :] = o0.astype(o_ref.dtype)
        o_ref[0, 1 * nb:2 * nb, :] = o1.astype(o_ref.dtype)
        o_ref[0, 2 * nb:3 * nb, :] = o2.astype(o_ref.dtype)

    rotate(q_ref, qo_ref)
    rotate(k_ref, ko_ref)


def spherical_rope(q, k, coords, freq, *, tile_n=8192):
    """q, k: [B, heads, H, W, d]; coords: [B, H, W, 2]; freq: [heads, d//3, 2]."""
    B, heads, H, W, d = q.shape
    assert d % 3 == 0, "d_head must be a multiple of 3 for Spherical RoPE"
    nb = d // 3
    N = B * H * W
    esize = jnp.dtype(q.dtype).itemsize

    vmem_budget, num_cores = _tpu_budget()

    # ---- tile selection: biggest lane-dense tile that fits the VMEM budget ----
    tile = _round_down_128(int(tile_n))
    tile = min(tile, _round_up(N, 128))
    while tile > 128 and _tile_vmem_bytes(tile, nb, heads, esize) > vmem_budget:
        tile = _round_down_128(tile // 2)
    # Only on multi-TensorCore chips (v7x): make sure each core gets at least one
    # parallel iteration, preferring the heads axis over shrinking below the
    # overhead-amortizing tile size.
    if num_cores >= 2:
        while tile > 2048 and pl.cdiv(N, tile) * heads < num_cores:
            tile = _round_down_128(tile // 2)
    vmem_limit = int(min(vmem_budget,
                         max(32 * 1024 * 1024,
                             2 * _tile_vmem_bytes(tile, nb, heads, esize))))

    num_tiles = pl.cdiv(N, tile)   # ragged N handled by Pallas partial-block masking

    # ---- layout glue (plain XLA) ------------------------------------------
    # (B, heads, H, W, d) -> (heads, 3*nb, N): tokens on lanes, (comp, block) on sublanes.
    def to_kernel_layout(x):
        x = x.reshape(B, heads, H * W, nb, 3)
        x = jnp.transpose(x, (1, 4, 3, 0, 2))          # (heads, 3, nb, B, HW)
        return x.reshape(heads, 3 * nb, N)

    def from_kernel_layout(x):
        x = x.reshape(heads, 3, nb, B, H * W)
        x = jnp.transpose(x, (3, 0, 4, 2, 1))          # (B, heads, HW, nb, 3)
        return x.reshape(B, heads, H, W, d)

    qc = to_kernel_layout(q)
    kc = to_kernel_layout(k)
    lat = coords[..., 0].reshape(1, N).astype(jnp.float32)
    lon = coords[..., 1].reshape(1, N).astype(jnp.float32)
    # fold the coordinate scale (20.0) into the frequency tables
    flon = (20.0 * freq[..., 0]).reshape(heads, nb, 1).astype(jnp.float32)
    flat = (20.0 * freq[..., 1]).reshape(heads, nb, 1).astype(jnp.float32)

    # ---- specs -------------------------------------------------------------
    ang_spec = pl.BlockSpec((1, tile), lambda t, h: (0, t))
    # full table, constant block index -> fetched once, indexed by program_id in-kernel
    freq_spec = pl.BlockSpec((heads, nb, 1), lambda t, h: (0, 0, 0))
    qk_spec = pl.BlockSpec((1, 3 * nb, tile), lambda t, h: (h, 0, t))

    qo, ko = pl.pallas_call(
        spherical_rope_kernel,
        out_shape=(jax.ShapeDtypeStruct(qc.shape, q.dtype),
                   jax.ShapeDtypeStruct(kc.shape, k.dtype)),
        grid_spec=pltpu.PrefetchScalarGridSpec(
            num_scalar_prefetch=0,
            grid=(num_tiles, heads),                    # tiles outer, heads inner
            in_specs=[ang_spec, ang_spec, freq_spec, freq_spec, qk_spec, qk_spec],
            out_specs=(qk_spec, qk_spec),
        ),
        compiler_params=pltpu.CompilerParams(
            dimension_semantics=("parallel", "parallel"),
            vmem_limit_bytes=vmem_limit),
    )(lat, lon, flon, flat, qc, kc)

    return from_kernel_layout(qo), from_kernel_layout(ko)


def spherical_rope_ref(q, k, coords, freq):
    """Pure-JAX mirror of the PyTorch forward, for verification."""
    B, heads, H, W, d = q.shape
    nb = d // 3
    lat = (coords[..., 0] * 20.0)[:, None, None]            # (B,1,1,H,W)
    lon = (coords[..., 1] * 20.0)[:, None, None]
    flon = freq[..., 0][None, :, :, None, None]             # (1,heads,nb,1,1)
    flat = freq[..., 1][None, :, :, None, None]
    A = lon * flon                                          # (B,heads,nb,H,W)
    Bb = lat * flat
    perm = (0, 1, 3, 4, 2)
    cA = jnp.transpose(jnp.cos(A), perm)
    sA = jnp.transpose(jnp.sin(A), perm)
    cB = jnp.transpose(jnp.cos(Bb), perm)
    sB = jnp.transpose(jnp.sin(Bb), perm)

    def rot(x):
        xb = x.reshape(B, heads, H, W, nb, 3)
        x0, x1, x2 = xb[..., 0], xb[..., 1], xb[..., 2]
        o0 = cA * x0 - cB * sA * x1 + sB * sA * x2
        o1 = sA * x0 + cB * cA * x1 - sB * cA * x2
        o2 = sB * x1 + cB * x2
        return jnp.stack([o0, o1, o2], axis=-1).reshape(B, heads, H, W, d)

    return rot(q), rot(k)


def _run_case(key, B, heads, H, W, d):
    nb = d // 3
    k1, k2, k3, k4 = jax.random.split(key, 4)
    q = jax.random.normal(k1, (B, heads, H, W, d), jnp.float32)
    k = jax.random.normal(k2, (B, heads, H, W, d), jnp.float32)
    coords = jax.random.uniform(k3, (B, H, W, 2), jnp.float32, minval=-1.0, maxval=1.0)
    # deterministic "parameter" init: nn.init.normal_(std=0.02)
    freq = 0.02 * jax.random.normal(k4, (heads, nb, 2), jnp.float32)

    qo, ko = spherical_rope(q, k, coords, freq)
    jax.block_until_ready((qo, ko))

    qr, kr = spherical_rope_ref(q, k, coords, freq)
    assert np.allclose(np.asarray(qo), np.asarray(qr), atol=1e-5, rtol=1e-5)
    assert np.allclose(np.asarray(ko), np.asarray(kr), atol=1e-5, rtol=1e-5)


if __name__ == "__main__":
    key = jax.random.PRNGKey(0)
    key_a, key_b = jax.random.split(key)

    # main case: B=2, heads=4, 16x16 tokens, d_head=24 (nb=8)
    _run_case(key_a, B=2, heads=4, H=16, W=16, d=24)
    # ragged case: N = 1*10*12 = 120 is not a multiple of 128 -> exercises the
    # unpadded partial-final-block (masked store) path
    _run_case(key_b, B=1, heads=2, H=10, W=12, d=24)

    print("KERNEL_OK")
</pallas_src>

<mosaic_0001>
module attributes {stable_mosaic.version = 11 : i64} {
  func.func @spherical_rope_kernel(%arg0: i32, %arg1: i32, %arg2: memref<1x512xf32, #tpu.memory_space<vmem>>, %arg3: memref<1x512xf32, #tpu.memory_space<vmem>>, %arg4: memref<4x8x1xf32, #tpu.memory_space<vmem>>, %arg5: memref<4x8x1xf32, #tpu.memory_space<vmem>>, %arg6: memref<1x24x512xf32, #tpu.memory_space<vmem>>, %arg7: memref<1x24x512xf32, #tpu.memory_space<vmem>>, %arg8: memref<1x24x512xf32, #tpu.memory_space<vmem>>, %arg9: memref<1x24x512xf32, #tpu.memory_space<vmem>>) attributes {dimension_semantics = [#tpu.dimension_semantics<parallel>, #tpu.dimension_semantics<parallel>], iteration_bounds = array<i64: 1, 4>, scalar_prefetch = 0 : i64, scratch_operands = 0 : i64, tpu.core_type = #tpu.core_type<tc>, window_params = [{transform_indices = @transform_0, window_bounds = array<i64: 1, 512>}, {transform_indices = @transform_1, window_bounds = array<i64: 1, 512>}, {pipeline_mode = #tpu.pipeline_mode<synchronous>, transform_indices = @transform_2, window_bounds = array<i64: 4, 8, 1>}, {pipeline_mode = #tpu.pipeline_mode<synchronous>, transform_indices = @transform_3, window_bounds = array<i64: 4, 8, 1>}, {transform_indices = @transform_4, window_bounds = array<i64: 1, 24, 512>}, {transform_indices = @transform_5, window_bounds = array<i64: 1, 24, 512>}, {transform_indices = @transform_6, window_bounds = array<i64: 1, 24, 512>}, {transform_indices = @transform_7, window_bounds = array<i64: 1, 24, 512>}]} {
    %c0 = arith.constant 0 : index
    %c0_0 = arith.constant 0 : index
    %0 = vector.load %arg3[%c0, %c0_0] : memref<1x512xf32, #tpu.memory_space<vmem>>, vector<1x512xf32>
    %c0_1 = arith.constant 0 : index
    %c0_2 = arith.constant 0 : index
    %1 = vector.load %arg2[%c0_1, %c0_2] : memref<1x512xf32, #tpu.memory_space<vmem>>, vector<1x512xf32>
    %2 = arith.index_cast %arg1 : i32 to index
    %c0_3 = arith.constant 0 : index
    %c0_4 = arith.constant 0 : index
    %3 = vector.load %arg4[%2, %c0_3, %c0_4] : memref<4x8x1xf32, #tpu.memory_space<vmem>>, vector<1x8x1xf32>
    %4 = vector.shape_cast %3 : vector<1x8x1xf32> to vector<8x1xf32>
    %5 = arith.index_cast %arg1 : i32 to index
    %c0_5 = arith.constant 0 : index
    %c0_6 = arith.constant 0 : index
    %6 = vector.load %arg5[%5, %c0_5, %c0_6] : memref<4x8x1xf32, #tpu.memory_space<vmem>>, vector<1x8x1xf32>
    %7 = vector.shape_cast %6 : vector<1x8x1xf32> to vector<8x1xf32>
    %8 = vector.broadcast %0 : vector<1x512xf32> to vector<8x512xf32>
    %9 = vector.broadcast %4 : vector<8x1xf32> to vector<8x512xf32>
    %10 = arith.mulf %8, %9 : vector<8x512xf32>
    %11 = math.cos %10 : vector<8x512xf32>
    %12 = vector.broadcast %0 : vector<1x512xf32> to vector<8x512xf32>
    %13 = vector.broadcast %4 : vector<8x1xf32> to vector<8x512xf32>
    %14 = arith.mulf %12, %13 : vector<8x512xf32>
    %15 = math.sin %14 : vector<8x512xf32>
    %16 = vector.broadcast %1 : vector<1x512xf32> to vector<8x512xf32>
    %17 = vector.broadcast %7 : vector<8x1xf32> to vector<8x512xf32>
    %18 = arith.mulf %16, %17 : vector<8x512xf32>
    %19 = math.cos %18 : vector<8x512xf32>
    %20 = vector.broadcast %1 : vector<1x512xf32> to vector<8x512xf32>
    %21 = vector.broadcast %7 : vector<8x1xf32> to vector<8x512xf32>
    %22 = arith.mulf %20, %21 : vector<8x512xf32>
    %23 = math.sin %22 : vector<8x512xf32>
    %c0_7 = arith.constant 0 : index
    %c0_8 = arith.constant 0 : index
    %c0_9 = arith.constant 0 : index
    %24 = vector.load %arg6[%c0_7, %c0_8, %c0_9] : memref<1x24x512xf32, #tpu.memory_space<vmem>>, vector<1x24x512xf32>
    %25 = vector.shape_cast %24 : vector<1x24x512xf32> to vector<24x512xf32>
    %26 = vector.extract_strided_slice %25 {offsets = [0, 0], sizes = [8, 512], strides = [1, 1]} : vector<24x512xf32> to vector<8x512xf32>
    %27 = vector.extract_strided_slice %25 {offsets = [8, 0], sizes = [8, 512], strides = [1, 1]} : vector<24x512xf32> to vector<8x512xf32>
    %28 = vector.extract_strided_slice %25 {offsets = [16, 0], sizes = [8, 512], strides = [1, 1]} : vector<24x512xf32> to vector<8x512xf32>
    %29 = arith.mulf %19, %27 : vector<8x512xf32>
    %30 = arith.mulf %23, %28 : vector<8x512xf32>
    %31 = arith.subf %29, %30 : vector<8x512xf32>
    %32 = arith.mulf %23, %27 : vector<8x512xf32>
    %33 = arith.mulf %19, %28 : vector<8x512xf32>
    %34 = arith.addf %32, %33 : vector<8x512xf32>
    %35 = arith.mulf %11, %26 : vector<8x512xf32>
    %36 = arith.mulf %15, %31 : vector<8x512xf32>
    %37 = arith.subf %35, %36 : vector<8x512xf32>
    %38 = arith.mulf %15, %26 : vector<8x512xf32>
    %39 = arith.mulf %11, %31 : vector<8x512xf32>
    %40 = arith.addf %38, %39 : vector<8x512xf32>
    %c0_10 = arith.constant 0 : index
    %c0_11 = arith.constant 0 : index
    %c0_12 = arith.constant 0 : index
    %41 = vector.load %arg8[%c0_10, %c0_11, %c0_12] : memref<1x24x512xf32, #tpu.memory_space<vmem>>, vector<1x8x512xf32>
    %42 = vector.shape_cast %41 : vector<1x8x512xf32> to vector<8x512xf32>
    %43 = vector.shape_cast %37 : vector<8x512xf32> to vector<1x8x512xf32>
    tpu.vector_store %arg8[%c0_10, %c0_11, %c0_12], %43 {strides = array<i32>} : memref<1x24x512xf32, #tpu.memory_space<vmem>>, vector<1x8x512xf32>,
    %c0_13 = arith.constant 0 : index
    %c8 = arith.constant 8 : index
    %c0_14 = arith.constant 0 : index
    %44 = vector.load %arg8[%c0_13, %c8, %c0_14] : memref<1x24x512xf32, #tpu.memory_space<vmem>>, vector<1x8x512xf32>
    %45 = vector.shape_cast %44 : vector<1x8x512xf32> to vector<8x512xf32>
    %46 = vector.shape_cast %40 : vector<8x512xf32> to vector<1x8x512xf32>
    tpu.vector_store %arg8[%c0_13, %c8, %c0_14], %46 {strides = array<i32>} : memref<1x24x512xf32, #tpu.memory_space<vmem>>, vector<1x8x512xf32>,
    %c0_15 = arith.constant 0 : index
    %c16 = arith.constant 16 : index
    %c0_16 = arith.constant 0 : index
    %47 = vector.load %arg8[%c0_15, %c16, %c0_16] : memref<1x24x512xf32, #tpu.memory_space<vmem>>, vector<1x8x512xf32>
    %48 = vector.shape_cast %47 : vector<1x8x512xf32> to vector<8x512xf32>
    %49 = vector.shape_cast %34 : vector<8x512xf32> to vector<1x8x512xf32>
    tpu.vector_store %arg8[%c0_15, %c16, %c0_16], %49 {strides = array<i32>} : memref<1x24x512xf32, #tpu.memory_space<vmem>>, vector<1x8x512xf32>,
    %c0_17 = arith.constant 0 : index
    %c0_18 = arith.constant 0 : index
    %c0_19 = arith.constant 0 : index
    %50 = vector.load %arg7[%c0_17, %c0_18, %c0_19] : memref<1x24x512xf32, #tpu.memory_space<vmem>>, vector<1x24x512xf32>
    %51 = vector.shape_cast %50 : vector<1x24x512xf32> to vector<24x512xf32>
    %52 = vector.extract_strided_slice %51 {offsets = [0, 0], sizes = [8, 512], strides = [1, 1]} : vector<24x512xf32> to vector<8x512xf32>
    %53 = vector.extract_strided_slice %51 {offsets = [8, 0], sizes = [8, 512], strides = [1, 1]} : vector<24x512xf32> to vector<8x512xf32>
    %54 = vector.extract_strided_slice %51 {offsets = [16, 0], sizes = [8, 512], strides = [1, 1]} : vector<24x512xf32> to vector<8x512xf32>
    %55 = arith.mulf %19, %53 : vector<8x512xf32>
    %56 = arith.mulf %23, %54 : vector<8x512xf32>
    %57 = arith.subf %55, %56 : vector<8x512xf32>
    %58 = arith.mulf %23, %53 : vector<8x512xf32>
    %59 = arith.mulf %19, %54 : vector<8x512xf32>
    %60 = arith.addf %58, %59 : vector<8x512xf32>
    %61 = arith.mulf %11, %52 : vector<8x512xf32>
    %62 = arith.mulf %15, %57 : vector<8x512xf32>
    %63 = arith.subf %61, %62 : vector<8x512xf32>
    %64 = arith.mulf %15, %52 : vector<8x512xf32>
    %65 = arith.mulf %11, %57 : vector<8x512xf32>
    %66 = arith.addf %64, %65 : vector<8x512xf32>
    %c0_20 = arith.constant 0 : index
    %c0_21 = arith.constant 0 : index
    %c0_22 = arith.constant 0 : index
    %67 = vector.load %arg9[%c0_20, %c0_21, %c0_22] : memref<1x24x512xf32, #tpu.memory_space<vmem>>, vector<1x8x512xf32>
    %68 = vector.shape_cast %67 : vector<1x8x512xf32> to vector<8x512xf32>
    %69 = vector.shape_cast %63 : vector<8x512xf32> to vector<1x8x512xf32>
    tpu.vector_store %arg9[%c0_20, %c0_21, %c0_22], %69 {strides = array<i32>} : memref<1x24x512xf32, #tpu.memory_space<vmem>>, vector<1x8x512xf32>,
    %c0_23 = arith.constant 0 : index
    %c8_24 = arith.constant 8 : index
    %c0_25 = arith.constant 0 : index
    %70 = vector.load %arg9[%c0_23, %c8_24, %c0_25] : memref<1x24x512xf32, #tpu.memory_space<vmem>>, vector<1x8x512xf32>
    %71 = vector.shape_cast %70 : vector<1x8x512xf32> to vector<8x512xf32>
    %72 = vector.shape_cast %66 : vector<8x512xf32> to vector<1x8x512xf32>
    tpu.vector_store %arg9[%c0_23, %c8_24, %c0_25], %72 {strides = array<i32>} : memref<1x24x512xf32, #tpu.memory_space<vmem>>, vector<1x8x512xf32>,
    %c0_26 = arith.constant 0 : index
    %c16_27 = arith.constant 16 : index
    %c0_28 = arith.constant 0 : index
    %73 = vector.load %arg9[%c0_26, %c16_27, %c0_28] : memref<1x24x512xf32, #tpu.memory_space<vmem>>, vector<1x8x512xf32>
    %74 = vector.shape_cast %73 : vector<1x8x512xf32> to vector<8x512xf32>
    %75 = vector.shape_cast %60 : vector<8x512xf32> to vector<1x8x512xf32>
    tpu.vector_store %arg9[%c0_26, %c16_27, %c0_28], %75 {strides = array<i32>} : memref<1x24x512xf32, #tpu.memory_space<vmem>>, vector<1x8x512xf32>,
    return
  }
  func.func @transform_0(%arg0: i32, %arg1: i32) -> (i32, i32) {
    %c0_i32 = arith.constant 0 : i32
    %c0_i32_0 = arith.constant 0 : i32
    return %c0_i32, %arg0 : i32, i32
  }
  func.func @transform_1(%arg0: i32, %arg1: i32) -> (i32, i32) {
    %c0_i32 = arith.constant 0 : i32
    %c0_i32_0 = arith.constant 0 : i32
    return %c0_i32, %arg0 : i32, i32
  }
  func.func @transform_2(%arg0: i32, %arg1: i32) -> (i32, i32, i32) {
    %c0_i32 = arith.constant 0 : i32
    %c0_i32_0 = arith.constant 0 : i32
    %c0_i32_1 = arith.constant 0 : i32
    %c0_i32_2 = arith.constant 0 : i32
    return %c0_i32, %c0_i32_0, %c0_i32_1 : i32, i32, i32
  }
  func.func @transform_3(%arg0: i32, %arg1: i32) -> (i32, i32, i32) {
    %c0_i32 = arith.constant 0 : i32
    %c0_i32_0 = arith.constant 0 : i32
    %c0_i32_1 = arith.constant 0 : i32
    %c0_i32_2 = arith.constant 0 : i32
    return %c0_i32, %c0_i32_0, %c0_i32_1 : i32, i32, i32
  }
  func.func @transform_4(%arg0: i32, %arg1: i32) -> (i32, i32, i32) {
    %c0_i32 = arith.constant 0 : i32
    %c0_i32_0 = arith.constant 0 : i32
    return %arg1, %c0_i32, %arg0 : i32, i32, i32
  }
  func.func @transform_5(%arg0: i32, %arg1: i32) -> (i32, i32, i32) {
    %c0_i32 = arith.constant 0 : i32
    %c0_i32_0 = arith.constant 0 : i32
    return %arg1, %c0_i32, %arg0 : i32, i32, i32
  }
  func.func @transform_6(%arg0: i32, %arg1: i32) -> (i32, i32, i32) {
    %c0_i32 = arith.constant 0 : i32
    %c0_i32_0 = arith.constant 0 : i32
    return %arg1, %c0_i32, %arg0 : i32, i32, i32
  }
  func.func @transform_7(%arg0: i32, %arg1: i32) -> (i32, i32, i32) {
    %c0_i32 = arith.constant 0 : i32
    %c0_i32_0 = arith.constant 0 : i32
    return %arg1, %c0_i32, %arg0 : i32, i32, i32
  }
}

</mosaic_0001>

<bundles_post_ra>
// kernel: tpu_custom_call.1
= control target key start
LH: loop header
LB: loop body
LE: loop exit
PB: predicated region body
PF: predicated region fallthrough
CT: control target
= control target key end

     0   :  { %s4200_s0 = inlined_call_operand.vmem [shape: f32[1,512], index: 0, kind: input, shape index: {}]   ;;  %s4201_s1 = inlined_call_operand.vmem [shape: f32[1,512], index: 1, kind: input, shape index: {}]   ;;  %s4202_s2 = inlined_call_operand.vmem [shape: f32[4,8,1], index: 2, kind: input, shape index: {}]   ;;  %s4203_s3 = inlined_call_operand.vmem [shape: f32[4,8,1], index: 3, kind: input, shape index: {}]   ;;  %s4204_s4 = inlined_call_operand.hbm [shape: f32[4,24,512], index: 4, kind: input, shape index: {}]   ;;  %s4205_s5 = inlined_call_operand.hbm [shape: f32[4,24,512], index: 5, kind: input, shape index: {}]   ;;  %s4206_s6 = inlined_call_operand.hbm [shape: f32[4,24,512], index: 6, kind: output, shape index: {0}]   ;;  %s4207_s7 = inlined_call_operand.hbm [shape: f32[4,24,512], index: 7, kind: output, shape index: {1}]  }
   0x1   :  { %4213 = sst [smem:[#allocation16_spill]] %s4204_s4 }
   0x2   :  { %13 = vsyncpa [#allocation3], 0 }
   0x3   :  { %15 = vsyncpa [#allocation3 + $0x1], 0 }
   0x4   :  { %16 = vsyncpa [#allocation6], 0 }
   0x5   :  { %18 = vsyncpa [#allocation6 + $0x1], 0 }
   0x6   :  { %19 = vsyncpa [#allocation4], 0 }
   0x7   :  { %21 = vsyncpa [#allocation4 + $0x1], 0 }
   0x8   :  { %22 = vsyncpa [#allocation9], 0 }
   0x9   :  { %24 = vsyncpa [#allocation9 + $0x1], 0  ;;  %s2964_s24 = smov 0   ;;  %s2966_s25 = smov 0  }
   0xa   :  { %s2968_s26 = smov 0   ;;  %s2970_s27 = smov 0  }
   0xb   :  { %s2972_s28 = smov 0   ;;  %s2974_s29 = smov 0  }
   0xc LB: > { %s2496_s30 = sadd.s32 4294967295, %s2907_s29   ;;  %s2497_s8 = sadd.s32 4294967294, %s2907_s29   ;;  %s2907_s29 = sphi %s2974_s29, %s30_s29   ;;  %s2903_s28 = sphi %s2972_s28, %s4251_s28   ;;  %s2899_s27 = sphi %s2970_s27, %s4250_s27   ;;  %s2895_s26 = sphi %s2968_s26, %s4249_s26   ;;  %s2891_s25 = sphi %s2966_s25, %s4248_s25   ;;  %s2887_s24 = sphi %s2964_s24, %s4247_s24  }
   0xd   : > { %s39_s9 = sadd.s32 1, %s2903_s28  ;;  %s145_s10 = sadd.s32 1, %s2895_s26 }
   0xe   : > { %p40_p0 = scmp.ge.s32.totalorder %s39_s9, 4  ;;  %p152_p1 = scmp.ne.s32.totalorder %s2895_s26, %s2891_s25 }
   0xf   : > { %p153_p2 = scmp.eq.s32.totalorder %s2907_s29, 0  ;;  %p158_p3 = scmp.ne.s32.totalorder %s2891_s25, %s2887_s24 }
  0x10   : > { %s4253_s9 = smov (%p40_p0, %s39_s9), 0  ;;  %p159_p5 = scmp.eq.s32.totalorder %s2496_s30, 0 }
  0x11   : > { %4214 = sst [smem:[#allocation14_spill]] %s4253_s9  ;;  %p3005_p4 = por %p153_p2, %p152_p1 }
  0x12   : > { %s140_s12 = ssub.s32 %s2903_s28, %s4253_s9  ;;  %p212_p6 = scmp.eq.s32.totalorder %s2496_s30, 3 }
  0x13   : > { %p143_p7 = scmp.eq.s32.totalorder %s140_s12, 0  ;;  %p3011_p8 = por %p159_p5, %p158_p3 }
  0x14   : > { %p3015_p9 = por %p212_p6, %p152_p1  ;;  %p218_p10 = scmp.eq.s32.totalorder %s2497_s8, 3 }
  0x15   : > { %s4216_s13 = scalar_select %p3011_p8, 1, 0 }
  0x16   : > { %s4217_s14 = scalar_select %p3015_p9, 1, 0 }
  0x17   : > { %s3020_s15 = scalar_select %p143_p7, %s2895_s26, %s145_s10  }
  0x18   : > { %p3022_p11 = por %p218_p10, %p158_p3  ;;  %p2635_p12 = scmp.lt.s32.totalorder %s2907_s29, 4 }
  0x19   : > { %4218 = sst [smem:[#allocation15_spill]] %s3020_s15  ;;  %s3028_s17 = sand.u32 1, %s2895_s26  }
  0x1a   : > { %s4219_s16 = scalar_select %p3022_p11, 1, 0 }
  0x1b   : > { %s2574_s18 = smul.u32 96, %s3028_s17  ;;  %p3034_p13 = pnand %p2635_p12, %p3005_p4 }
  0x1c   : > { %s4208_s19 = smul.u32 1536, %s2903_s28  ;;  %s4221_s4 = sld [smem:[#allocation16_spill]] }
  0x1d   : > { %s292_s30 = scalar_lea.vmem [#allocation2], %s2574_s18  ;;  %s289_s10 = scalar_lea.sflag [#allocation3], %s3028_s17 }
  0x1e   : > { %s301_s8 = sshll.u32 %s292_s30, 4  ;;  %p2731_p2 = pneg %p3034_p13  ;;  %s3047_s8 = int_to_ptr.vmem [resolvable:$true] %s301_s8 }
  0x22   : > { %s3043_s23 = scalar_lea.hbm %s4221_s4, %s4208_s19  ;;  %s2734_s22 = scalar_lea.hbm %s4221_s4, 6144 }
  0x23   : > { %s2729_s11 = scalar_lea.hbm %s3043_s23, 1536  ;;  %p2735_p5 = scmp.lt.u32.totalorder %s3043_s23, %s4221_s4 }
  0x24   : > { %p2730_p1 = scmp.ne.s32.totalorder %s3043_s23, %s2729_s11  ;;  %p2736_p6 = scmp.lt.u32.totalorder %s2734_s22, %s2729_s11 }
  0x25   : > { %p2738_p10 = scmp.lt.u32.totalorder %s2729_s11, %s3043_s23 }
  0x26   : > { %p2732_p3 = pnand %p2731_p2, %p2730_p1  ;;  %p2737_p7 = por %p2736_p6, %p2735_p5 }
  0x28   : > { %p2733_p4 = pneg %p2732_p3  ;;  %p2739_p12 = por %p2738_p10, %p2737_p7 }
  0x2a   : > { %p2740_p0 = pnand %p2739_p12, %p2733_p4 }
  0x2c   : > { %2743 = shalt.err (!%p2740_p0)
}
  0x2d   : > { %s2744_s30 = scalar_lea.vmem %s3047_s8, 1536  ;;  %s2909_s12 = smov [#allocation2]  }
  0x2e   : > { %p2745_p1 = scmp.ne.s32.totalorder %s3047_s8, %s2744_s30  ;;  %s2749_s21 = sshll.u32 %s2909_s12, 4  ;;  %s2750_s21 = int_to_ptr.vmem [resolvable:$false] %s2749_s21 }
  0x2f   : > { %s2751_s9 = scalar_lea.vmem %s2750_s21, 3072  ;;  %p2752_p9 = scmp.lt.s32.totalorder %s3047_s8, %s2750_s21 }
  0x30   : > { %p2747_p3 = pnand %p2745_p1, %p2731_p2  ;;  %p2753_p5 = scmp.lt.s32.totalorder %s2751_s9, %s2744_s30 }
  0x32   : > { %p2748_p11 = pneg %p2747_p3  ;;  %p2754_p6 = por %p2753_p5, %p2752_p9 }
  0x34   : > { %p2755_p7 = pnand %p2754_p6, %p2748_p11 }
  0x36   : > { %2758 = shalt.err (!%p2755_p7)
}
  0x37   : > { %s4211_s19 = smov 512   ;;  %s2911_s11 = smov 32  }
  0x38   : > { %2624 = dma.hbm_to_vmem [thread:$0]  (!%p3034_p13), %s3043_s23, 1536, %s3047_s8, %s289_s10, %s4211_s19, %s4211_s19, %s2911_s11  }
  0x39   : > { %p332_p9 = scmp.lt.s32.totalorder %s2907_s29, 5  ;;  %s4222_s22 = smul.u32 1536, %s2903_s28 }
  0x3a   : > { %p4223_p11 = scmp.ge.s32.totalorder %s2907_s29, 1  ;;  %s315_s4 = scalar_lea.vmem [#allocation5], %s2574_s18 }
  0x3b   : > { %s3087_s21 = scalar_lea.hbm %s4205_s5, %s4222_s22  ;;  %s324_s15 = sshll.u32 %s315_s4, 4  ;;  %s3097_s15 = int_to_ptr.vmem [resolvable:$true] %s324_s15 }
  0x3c   : > { %p3091_p0 = pnand %p4223_p11, %p332_p9  ;;  %s312_s23 = scalar_lea.sflag [#allocation6], %s3028_s17 }
  0x3d   : > { %s2759_s8 = scalar_lea.hbm %s3087_s21, 1536  ;;  %s2764_s30 = scalar_lea.hbm %s4205_s5, 6144 }
  0x3e   : > { %p2760_p4 = scmp.ne.s32.totalorder %s3087_s21, %s2759_s8  ;;  %p2765_p1 = scmp.lt.u32.totalorder %s3087_s21, %s4205_s5 }
  0x3f   : > { %p2766_p3 = scmp.lt.u32.totalorder %s2764_s30, %s2759_s8  ;;  %p2768_p6 = scmp.lt.u32.totalorder %s2759_s8, %s3087_s21 }
  0x40   : > { %p2762_p10 = pnand %p2760_p4, %p2731_p2 }
  0x41   : > { %p2767_p5 = por %p2766_p3, %p2765_p1 }
  0x42   : > { %p2763_p12 = pneg %p2762_p10 }
  0x43   : > { %p2769_p7 = por %p2768_p6, %p2767_p5 }
  0x45   : > { %p2770_p9 = pnand %p2769_p7, %p2763_p12 }
  0x47   : > { %2773 = shalt.err (!%p2770_p9)
}
  0x48   : > { %s2774_s4 = scalar_lea.vmem %s3097_s15, 1536  ;;  %s2912_s18 = smov [#allocation5]  }
  0x49   : > { %p2775_p11 = scmp.ne.s32.totalorder %s3097_s15, %s2774_s4  ;;  %s2779_s10 = sshll.u32 %s2912_s18, 4  ;;  %s2780_s10 = int_to_ptr.vmem [resolvable:$false] %s2779_s10 }
  0x4a   : > { %s2781_s19 = scalar_lea.vmem %s2780_s10, 3072  ;;  %p2782_p8 = scmp.lt.s32.totalorder %s3097_s15, %s2780_s10 }
  0x4b   : > { %p2777_p4 = pnand %p2775_p11, %p2731_p2  ;;  %p2783_p1 = scmp.lt.s32.totalorder %s2781_s19, %s2774_s4 }
  0x4d   : > { %p2778_p10 = pneg %p2777_p4  ;;  %p2784_p3 = por %p2783_p1, %p2782_p8 }
  0x4f   : > { %p2785_p5 = pnand %p2784_p3, %p2778_p10 }
  0x51   : > { %2788 = shalt.err (!%p2785_p5)
}
  0x52   : > { %s4225_s8 = smov 512   ;;  %336 = sbr.rel (%p3091_p0) target bundleno = 518 (0x206), region = 44 }
  0x53   : > { %2627 = dma.hbm_to_vmem [thread:$0]  (!%p3034_p13), %s3087_s21, 1536, %s3097_s15, %s312_s23, %s4225_s8, %s4225_s8, %s2911_s11  }
  0x54   : > { %s3131_s22 = sand.u32 (!%p3091_p0), 1, %s2891_s25   ;;  %p4226_p8 = scmp.ne.s32.totalorder (!%p3091_p0), %s4216_s13, 0 }
  0x55   : > { %s3134_s30 = smul.u32 (!%p3091_p0), 96, %s3131_s22  ;;  %s339_s20 = scalar_lea.sflag (!%p3091_p0), [#allocation3], %s3131_s22 }
  0x57   : > { %s3138_s12 = scalar_lea.vmem (!%p3091_p0), [#allocation2], %s3134_s30 }
  0x59   : > { %2870 = dma.done.wait (%p4226_p8), %s339_s20, 1536  }
  0x5a   : > { %2872 = vsyncadd (%p4226_p8), %s339_s20, 4294965760  ;;  %s348_s15 = scalar_lea.sflag [#allocation6], %s3131_s22  ;;  %s3146_s17 = scalar_lea.vmem [#allocation5], %s3134_s30 }
  0x5b   : > { %2874 = dma.done.wait (%p4226_p8), %s348_s15, 1536  }
  0x5c   : > { %2876 = vsyncadd (%p4226_p8), %s348_s15, 4294965760  ;;  %v2913_v0 = vmov 0   ;;  %s2505_s11 = sshll.u32 %s2899_s27, 3  ;;  %v422_v3 = vlaneseq  ;;  %v414_v5 = vld [vmem:[%s4201_s1] sm:$0xf]  ;;  %s3952_s15 = scalar_lea.vmem [#allocation7], %s3134_s30 }
  0x5d   : > { %2696 = vset.pattern.permute.xlu0 %v2913_v0  ;;  %s419_s23 = scalar_lea.vmem %s4203_s3, %s2505_s11  ;;  %s417_s10 = scalar_lea.vmem %s4202_s2, %s2505_s11  ;;  %v2914_v45 = vmov 683565275   ;;  %v2915_v49 = vmov 2475754826   ;;  %v2916_v51 = vmov 2131351028  }
  0x5e   : > { %v420_v1 = vld [vmem:[%s419_s23] sm:$0xff]  ;;  %v3159_v4 = vshrl.u32 %v422_v3, 7  ;;  %v2917_v53 = vmov 2102212464   ;;  %v2918_v55 = vmov 920167782  }
  0x5f   : > { %1302 = vperm.xlu0 %2696, %v420_v1   ;;  %v418_v2 = vld [vmem:[%s417_s10] sm:$0xff]  ;;  %v2919_v62 = vmov 1326507024   ;;  %s4022_s11 = scalar_lea.vmem [#allocation8], %s3134_s30  ;;  %s2611_s30 = smul.u32 1536, %s2899_s27 }
  0x60   : > { %v424_v6 = vsub.s32 0, %v3159_v4  ;;  %v428_v7 = vsub.s32 1, %v3159_v4  ;;  %v432_v9 = vsub.s32 2, %v3159_v4  ;;  %v436_v29 = vsub.s32 3, %v3159_v4  ;;  %s2302_s21 = sshll.u32 %s3952_s15, 4  ;;  %s2282_s10 = scalar_lea.sflag [#allocation4], %s3131_s22  ;;  %s4111_s21 = int_to_ptr.vmem [resolvable:$true] %s2302_s21 }
  0x61   : > { %s4109_s9 = scalar_lea.hbm %s4206_s6, %s2611_s30  ;;  %s4116_s18 = scalar_lea.hbm %s4207_s7, %s2611_s30 }
  0x62   : > { %v425_v10 = vrot.slane %v414_v5, %v424_v6  ;;  %v429_v11 = vrot.slane %v414_v5, %v428_v7  ;;  %v433_v12 = vrot.slane %v414_v5, %v432_v9  ;;  %v3198_v35 = vrot.slane %v414_v5, %v436_v29  ;;  %s2789_s13 = scalar_lea.vmem %s4111_s21, 1536  ;;  %p4243_p2 = scmp.ne.s32.totalorder %s4217_s14, 0 }
  0x63   : > { %444 = vperm.xlu0 %2696, %v418_v2   ;;  %p2790_p13 = scmp.ne.s32.totalorder %s4111_s21, %s2789_s13  ;;  %s2920_s19 = smov [#allocation7]  }
  0x64   : > { %s2793_s8 = sshll.u32 %s2920_s19, 4  ;;  %s2794_s8 = int_to_ptr.vmem [resolvable:$false] %s2793_s8 }
  0x65   : > { %p2791_p0 = pnand %p2790_p13, %p4243_p2  ;;  %s2795_s20 = scalar_lea.vmem %s2794_s8, 3072 }
  0x66   : > { %p2796_p6 = scmp.lt.s32.totalorder %s4111_s21, %s2794_s8  ;;  %p2797_p7 = scmp.lt.s32.totalorder %s2795_s20, %s2789_s13 }
  0x67   : > { %p2792_p12 = pneg %p2791_p0 }
  0x68   : > { %p2798_p9 = por %p2797_p7, %p2796_p6 }
  0x6a   : > { %p2799_p11 = pnand %p2798_p9, %p2792_p12 }
  0xde   : > { %v3166_v8 = vpop.permute.xlu0 %1302 }
  0xe2   : > { %v3175_v13 = vpop.permute.xlu0 %444 }
  0xe3   : > { %v3178_v14 = vmul.f32 %v3175_v13, %v425_v10  ;;  %v3181_v15 = vmul.f32 %v3175_v13, %v429_v11  ;;  %v3184_v16 = vmul.f32 %v3175_v13, %v433_v12 }
  0xe5   : > { %v451_v17 = vand.u32 2147483647, %v3178_v14  ;;  %v454_v18 = vand.u32 2139095040, %v3178_v14  ;;  %v554_v19 = vand.u32 2147483647, %v3181_v15  ;;  %v557_v20 = vand.u32 2139095040, %v3181_v15 }
  0xe6   : > { %v660_v25 = vand.u32 2139095040, %v3184_v16  ;;  %v657_v42 = vand.u32 2147483647, %v3184_v16 }
  0xe7   : > { %v455_v21 = vshrl.u32 %v454_v18, 23  ;;  %v458_v22 = vand.u32 8388607, %v451_v17  ;;  %v558_v23 = vshrl.u32 %v557_v20, 23  ;;  %v561_v24 = vand.u32 8388607, %v554_v19 }
  0xe8   : > { %v661_v28 = vshrl.u32 %v660_v25, 23 }
  0xe9   : > { %v2506_v26 = vadd.s32 4294967169, %v455_v21  ;;  %v2510_v27 = vadd.s32 4294967169, %v558_v23  ;;  %v459_v31 = vor.u32 8388608, %v458_v22  ;;  %v562_v32 = vor.u32 8388608, %v561_v24 }
  0xea   : > { %v2514_v34 = vadd.s32 4294967169, %v661_v28 }
  0xeb   : > { %v461_v30 = vadd.s32 1, %v2506_v26  ;;  %v564_v33 = vadd.s32 1, %v2510_v27  ;;  %v3200_v40 = vshll.u32 %v459_v31, 8  ;;  %v3202_v41 = vshll.u32 %v562_v32, 8 }
  0xec   : > { %v3205_v43 = vadd.s32 1, %v2514_v34 }
  0xed   : > { %vm462_vm0 = vcmp.gt.s32.totalorder %v461_v30, 0  ;;  %vm565_vm1 = vcmp.gt.s32.totalorder %v564_v33, 0 }
  0xee   : > { %v463_v36 = vsel %vm462_vm0, %v461_v30, 0  ;;  %v566_v39 = vsel %vm565_vm1, %v564_v33, 0  ;;  %vm668_vm6 = vcmp.gt.s32.totalorder %v3205_v43, 0 }
  0xef   : > { %v464_v37 = vshrl.u32 %v463_v36, 5  ;;  %v465_v38 = vand.u32 31, %v463_v36  ;;  %v3208_v47 = vshrl.u32 %v566_v39, 5  ;;  %v568_v48 = vand.u32 31, %v566_v39 }
  0xf1   : > { %v466_v44 = vsub.s32 32, %v465_v38  ;;  %v468_v46 = vshll.u32 %v2914_v45, %v465_v38  ;;  %v471_v50 = vshll.u32 %v2915_v49, %v465_v38  ;;  %v474_v52 = vshll.u32 %v2916_v51, %v465_v38 }
  0xf2   : > { %v477_v54 = vshll.u32 %v2917_v53, %v465_v38  ;;  %v480_v56 = vshll.u32 %v2918_v55, %v465_v38  ;;  %vm483_vm2 = vcmp.lt.s32.totalorder %v464_v37, 1  ;;  %vm484_vm3 = vcmp.lt.s32.totalorder %v464_v37, 2 }
  0xf3   : > { %v469_v57 = vshrl.u32 %v2915_v49, %v466_v44  ;;  %v472_v58 = vshrl.u32 %v2916_v51, %v466_v44  ;;  %v475_v59 = vshrl.u32 %v2917_v53, %v466_v44  ;;  %v467_v60 = vshrl.u32 %v2914_v45, %v466_v44 }
  0xf4   : > { %v478_v61 = vshrl.u32 %v2918_v55, %v466_v44  ;;  %v481_v63 = vshrl.u32 %v2919_v62, %v466_v44  ;;  %v569_v3 = vsub.s32 32, %v568_v48  ;;  %vm485_vm4 = vcmp.lt.s32.totalorder %v464_v37, 3 }
  0xf5   : > { %v470_v0 = vor.u32 %v469_v57, %v468_v46  ;;  %v473_v1 = vor.u32 %v472_v58, %v471_v50  ;;  %v476_v2 = vor.u32 %v475_v59, %v474_v52  ;;  %vm486_vm5 = vcmp.lt.s32.totalorder %v464_v37, 4 }
  0xf6   : > { %v479_v5 = vor.u32 %v478_v61, %v477_v54  ;;  %v482_v10 = vor.u32 %v481_v63, %v480_v56  ;;  %v571_v24 = vshll.u32 %v2914_v45, %v568_v48  ;;  %v572_v27 = vshrl.u32 %v2915_v49, %v569_v3 }
  0xf7   : > { %v487_v11 = vsel %vm483_vm2, %v467_v60, %v470_v0  ;;  %v488_v12 = vsel %vm486_vm5, %v476_v2, 2102212464  ;;  %v491_v18 = vsel %vm483_vm2, %v470_v0, %v473_v1  ;;  %v495_v20 = vsel %vm483_vm2, %v473_v1, %v476_v2 }
  0xf8   : > { %v489_v21 = vsel %vm485_vm4, %v473_v1, %v488_v12  ;;  %v492_v22 = vsel %vm486_vm5, %v479_v5, 920167782  ;;  %v496_v23 = vsel %vm486_vm5, %v482_v10, 1326507024  ;;  %v574_v28 = vshll.u32 %v2915_v49, %v568_v48 }
  0xf9   : > { %v493_v25 = vsel %vm485_vm4, %v476_v2, %v492_v22  ;;  %v497_v26 = vsel %vm485_vm4, %v479_v5, %v496_v23  ;;  %v490_v30 = vsel %vm484_vm3, %v487_v11, %v489_v21  ;;  %v575_v33 = vshrl.u32 %v2916_v51, %v569_v3 }
  0xfa   : > { %v494_v31 = vsel %vm484_vm3, %v491_v18, %v493_v25  ;;  %v498_v32 = vsel %vm484_vm3, %v495_v20, %v497_v26  ;;  %v573_v44 = vor.u32 %v572_v27, %v571_v24  ;;  %v577_v50 = vshll.u32 %v2916_v51, %v568_v48 }
  0xfb   : > { %v3232_v34 = vmul.u32.u64.low %v3200_v40, %v498_v32  ;;  %v3233_v36 = vmul.u32.u64.high %v3200_v40, %v498_v32, %v3232_v34  ;;  %v3236_v38 = vmul.u32.u64.low %v3200_v40, %v494_v31  ;;  %v3237_v39 = vmul.u32.u64.high %v3200_v40, %v494_v31, %v3236_v38 }
  0xfc   : > { %v576_v46 = vor.u32 %v575_v33, %v574_v28  ;;  %v578_v52 = vshrl.u32 %v2917_v53, %v569_v3  ;;  %v570_v37 = vshrl.u32 %v2914_v45, %v569_v3  ;;  %v580_v54 = vshll.u32 %v2917_v53, %v568_v48 }
  0xfd   : > { %v581_v56 = vshrl.u32 %v2918_v55, %v569_v3  ;;  %v584_v57 = vshrl.u32 %v2919_v62, %v569_v3  ;;  %v506_v58 = vmul.u32 %v3200_v40, %v490_v30  ;;  %v583_v60 = vshll.u32 %v2918_v55, %v568_v48 }
  0xfe   : > { %v579_v59 = vor.u32 %v578_v52, %v577_v50  ;;  %vm586_vm7 = vcmp.lt.s32.totalorder %v3208_v47, 1  ;;  %vm508_vm8 = vc.u32 %v3233_v36, %v3236_v38  ;;  %v509_v61 = vadd.s32 1, %v3237_v39 }
  0xff   : > { %v582_v63 = vor.u32 %v581_v56, %v580_v54  ;;  %vm587_vm9 = vcmp.lt.s32.totalorder %v3208_v47, 2  ;;  %v585_v0 = vor.u32 %v584_v57, %v583_v60  ;;  %vm588_vm10 = vcmp.lt.s32.totalorder %v3208_v47, 3 }
 0x100   : > { %vm589_vm11 = vcmp.lt.s32.totalorder %v3208_v47, 4  ;;  %v594_v1 = vsel %vm586_vm7, %v573_v44, %v576_v46  ;;  %v510_v40 = vsel %vm508_vm8, %v509_v61, %v3237_v39  ;;  %v598_v3 = vsel %vm586_vm7, %v576_v46, %v579_v59 }
 0x101   : > { %v591_v2 = vsel %vm589_vm11, %v579_v59, 2102212464  ;;  %v595_v48 = vsel %vm589_vm11, %v582_v63, 920167782  ;;  %v511_v5 = vadd.s32 %v510_v40, %v506_v58  ;;  %v590_v10 = vsel %vm586_vm7, %v570_v37, %v573_v44 }
 0x102   : > { %v596_v11 = vsel %vm588_vm10, %v579_v59, %v595_v48  ;;  %v599_v12 = vsel %vm589_vm11, %v585_v0, 1326507024  ;;  %v592_v18 = vsel %vm588_vm10, %v576_v46, %v591_v2  ;;  %v669_v22 = vsel %vm668_vm6, %v3205_v43, 0 }
 0x103   : > { %v597_v20 = vsel %vm587_vm9, %v594_v1, %v596_v11  ;;  %v600_v21 = vsel %vm588_vm10, %v582_v63, %v599_v12  ;;  %v512_v23 = vadd.s32 536870912, %v511_v5  ;;  %v3270_v27 = vmul.f32 %v3175_v13, %v3198_v35 }
 0x104   : > { %v601_v24 = vsel %vm587_vm9, %v598_v3, %v600_v21  ;;  %v3264_v25 = vmul.u32.u64.low %v3202_v41, %v597_v20  ;;  %v3265_v26 = vmul.u32.u64.high %v3202_v41, %v597_v20, %v3264_v25  ;;  %v664_v43 = vand.u32 8388607, %v657_v42 }
 0x105   : > { %v3273_v28 = vmul.u32.u64.low %v3202_v41, %v601_v24  ;;  %v3274_v30 = vmul.u32.u64.high %v3202_v41, %v601_v24, %v3273_v28  ;;  %v3278_v31 = vshrl.u32 %v512_v23, 30  ;;  %v593_v32 = vsel %vm587_vm9, %v590_v10, %v592_v18 }
 0x106   : > { %v671_v33 = vand.u32 31, %v669_v22  ;;  %v612_v39 = vadd.s32 1, %v3265_v26  ;;  %v609_v13 = vmul.u32 %v3202_v41, %v593_v32  ;;  %v665_v35 = vor.u32 8388608, %v664_v43 }
 0x107   : > { %v514_v34 = vshll.u32 %v3278_v31, 30  ;;  %vm611_vm12 = vc.u32 %v3274_v30, %v3264_v25  ;;  %v763_v46 = vand.u32 2139095040, %v3270_v27  ;;  %v670_v0 = vshrl.u32 %v669_v22, 5 }
 0x108   : > { %v672_v44 = vsub.s32 32, %v671_v33  ;;  %v613_v52 = vsel %vm611_vm12, %v612_v39, %v3265_v26  ;;  %v674_v57 = vshll.u32 %v2914_v45, %v671_v33  ;;  %v677_v59 = vshll.u32 %v2915_v49, %v671_v33 }
 0x109   : > { %v515_v50 = vsub.s32 %v511_v5, %v514_v34  ;;  %v614_v37 = vadd.s32 %v613_v52, %v609_v13  ;;  %v3294_v60 = vshll.u32 %v665_v35, 8  ;;  %v764_v61 = vshrl.u32 %v763_v46, 23 }
 0x10a   : > { %v675_v47 = vshrl.u32 %v2915_v49, %v672_v44  ;;  %v678_v54 = vshrl.u32 %v2916_v51, %v672_v44  ;;  %v681_v58 = vshrl.u32 %v2917_v53, %v672_v44  ;;  %v680_v40 = vshll.u32 %v2916_v51, %v671_v33 }
 0x10b   : > { %v517_v56 = vsub.s32 0, %v515_v50  ;;  %v615_v41 = vadd.s32 536870912, %v614_v37  ;;  %v683_v3 = vshll.u32 %v2917_v53, %v671_v33  ;;  %v684_v5 = vshrl.u32 %v2918_v55, %v672_v44 }
 0x10c   : > { %v676_v1 = vor.u32 %v675_v47, %v674_v57  ;;  %v679_v48 = vor.u32 %v678_v54, %v677_v59  ;;  %v682_v11 = vor.u32 %v681_v58, %v680_v40  ;;  %v686_v12 = vshll.u32 %v2918_v55, %v671_v33 }
 0x10d   : > { %v2507_v63 = vmin.u32 %v517_v56, %v515_v50  ;;  %v3297_v2 = vshrl.u32 %v615_v41, 30  ;;  %v687_v18 = vshrl.u32 %v2919_v62, %v672_v44  ;;  %v507_v20 = vadd.s32 %v3236_v38, %v3233_v36 }
 0x10e   : > { %v685_v22 = vor.u32 %v684_v5, %v683_v3  ;;  %v2518_v23 = vadd.s32 4294967169, %v764_v61  ;;  %vm689_vm13 = vcmp.lt.s32.totalorder %v670_v0, 1  ;;  %vm692_vm14 = vcmp.lt.s32.totalorder %v670_v0, 4 }
 0x10f   : > { %v519_v10 = vclz %v2507_v63  ;;  %v617_v21 = vshll.u32 %v3297_v2, 30  ;;  %v688_v26 = vor.u32 %v687_v18, %v686_v12  ;;  %vm691_vm15 = vcmp.lt.s32.totalorder %v670_v0, 3 }
 0x110   : > { %v697_v43 = vsel %vm689_vm13, %v676_v1, %v679_v48  ;;  %v698_v32 = vsel %vm692_vm14, %v685_v22, 920167782  ;;  %v694_v33 = vsel %vm692_vm14, %v682_v11, 2102212464  ;;  %v673_v13 = vshrl.u32 %v2914_v45, %v672_v44 }
 0x111   : > { %v2508_v24 = vadd.s32 4294967294, %v519_v10  ;;  %v3306_v28 = vsub.s32 %v614_v37, %v617_v21  ;;  %v699_v34 = vsel %vm691_vm15, %v682_v11, %v698_v32  ;;  %v702_v39 = vsel %vm692_vm14, %v688_v26, 1326507024 }
 0x112   : > { %v701_v35 = vsel %vm689_vm13, %v679_v48, %v682_v11  ;;  %vm690_vm1 = vcmp.lt.s32.totalorder %v670_v0, 2  ;;  %v703_v37 = vsel %vm691_vm15, %v685_v22, %v702_v39  ;;  %v693_v54 = vsel %vm689_vm13, %v673_v13, %v676_v1 }
 0x113   : > { %vm2509_vm0 = vcmp.lt.s32.totalorder %v2508_v24, 0  ;;  %v620_v38 = vsub.s32 0, %v3306_v28  ;;  %v695_v56 = vsel %vm691_vm15, %v679_v48, %v694_v33  ;;  %v700_v57 = vsel %vm690_vm1, %v697_v43, %v699_v34 }
 0x114   : > { %v522_v36 = vsel %vm2509_vm0, 0, %v2508_v24  ;;  %v704_v44 = vsel %vm690_vm1, %v701_v35, %v703_v37  ;;  %v770_v3 = vadd.s32 1, %v2518_v23  ;;  %v696_v18 = vsel %vm690_vm1, %v693_v54, %v695_v56 }
 0x115   : > { %v523_v46 = vsub.s32 32, %v522_v36  ;;  %v527_v52 = vsub.s32 4294967266, %v522_v36  ;;  %v2511_v47 = vmin.u32 %v620_v38, %v3306_v28  ;;  %v524_v58 = vshll.u32 %v515_v50, %v522_v36 }
 0x116   : > { %v3320_v63 = vmul.u32.u64.low %v3294_v60, %v704_v44  ;;  %v3321_v40 = vmul.u32.u64.high %v3294_v60, %v704_v44, %v3320_v63  ;;  %v3324_v11 = vmul.u32.u64.low %v3294_v60, %v700_v57  ;;  %v3325_v1 = vmul.u32.u64.high %v3294_v60, %v700_v57, %v3324_v11 }
 0x117   : > { %v525_v41 = vshrl.u32 %v507_v20, %v523_v46  ;;  %v528_v59 = vadd.s32 127, %v527_v52  ;;  %v622_v61 = vclz %v2511_v47  ;;  %v760_v50 = vand.u32 2147483647, %v3270_v27 }
 0x118   : > { %vm771_vm2 = vcmp.gt.s32.totalorder %v770_v3, 0  ;;  %vm714_vm4 = vc.u32 %v3321_v40, %v3324_v11  ;;  %v715_v24 = vadd.s32 1, %v3325_v1  ;;  %v712_v33 = vmul.u32 %v3294_v60, %v696_v18 }
 0x119   : > { %v526_v5 = vor.u32 %v525_v41, %v524_v58  ;;  %v529_v10 = vshll.u32 %v528_v59, 23  ;;  %v2512_v48 = vadd.s32 4294967294, %v622_v61  ;;  %v772_v20 = vsel %vm771_vm2, %v770_v3, 0  ;;  %v415_v3 = vld [vmem:[%s4200_s0] sm:$0xf] }
 0x11a   : > { %v774_v26 = vand.u32 31, %v772_v20  ;;  %v767_v34 = vand.u32 8388607, %v760_v50  ;;  %v716_v39 = vsel %vm714_vm4, %v715_v24, %v3325_v1  ;;  %v610_v38 = vadd.s32 %v3264_v25, %v3274_v30 }
 0x11b   : > { %v530_v12 = vor.u32 4788187, %v529_v10  ;;  %v533_v21 = vcvt.s32.f32 %v526_v5  ;;  %vm2513_vm3 = vcmp.lt.s32.totalorder %v2512_v48, 0  ;;  %v717_v35 = vadd.s32 %v716_v39, %v712_v33 }
 0x11c   : > { %v625_v23 = vsel %vm2513_vm3, 0, %v2512_v48  ;;  %v775_v36 = vsub.s32 32, %v774_v26  ;;  %vm453_vm5 = vcmp.lt.s32.totalorder %v3178_v14, 0  ;;  %v768_v54 = vor.u32 8388608, %v767_v34 }
 0x11d   : > { %v531_v22 = vand.u32 2147483647, %v530_v12  ;;  %v626_v43 = vsub.s32 32, %v625_v23  ;;  %v630_v32 = vsub.s32 4294967266, %v625_v23  ;;  %v718_v47 = vadd.s32 536870912, %v717_v35 }
 0x11e   : > { %v627_v60 = vshll.u32 %v3306_v28, %v625_v23  ;;  %v773_v56 = vshrl.u32 %v772_v20, 5  ;;  %v778_v57 = vshrl.u32 %v2915_v49, %v775_v36  ;;  %v781_v58 = vshrl.u32 %v2916_v51, %v775_v36 }
 0x11f   : > { %v534_v0 = vmul.f32 %v533_v21, %v531_v22  ;;  %v631_v13 = vadd.s32 127, %v630_v32  ;;  %v628_v52 = vshrl.u32 %v610_v38, %v626_v43  ;;  %v3343_v41 = vshrl.u32 %v718_v47, 30 }
 0x120   : > { %v777_v25 = vshll.u32 %v2914_v45, %v774_v26  ;;  %v780_v30 = vshll.u32 %v2915_v49, %v774_v26  ;;  %v784_v59 = vshrl.u32 %v2917_v53, %v775_v36  ;;  %v786_v63 = vshll.u32 %v2917_v53, %v774_v26 }
 0x121   : > { %v535_v46 = vxor.u32 2147483648, %v534_v0  ;;  %v632_v37 = vshll.u32 %v631_v13, 23  ;;  %v787_v28 = vshrl.u32 %v2918_v55, %v775_v36  ;;  %vm3357_vm6 = vcmp.le.f32.partialorder %v451_v17, 0.7853982 }
 0x122   : > { %v629_v10 = vor.u32 %v628_v52, %v627_v60  ;;  %v720_v1 = vshll.u32 %v3343_v41, 30  ;;  %v783_v48 = vshll.u32 %v2916_v51, %v774_v26  ;;  %v779_v12 = vor.u32 %v778_v57, %v777_v25 }
 0x123   : > { %v536_v44 = vsel %vm453_vm5, %v535_v46, %v534_v0  ;;  %v633_v61 = vor.u32 4788187, %v632_v37  ;;  %v782_v18 = vor.u32 %v781_v58, %v780_v30  ;;  %v788_v20 = vor.u32 %v787_v28, %v786_v63 }
 0x124   : > { %v790_v21 = vshrl.u32 %v2919_v62, %v775_v36  ;;  %v539_v22 = vsel %vm3357_vm6, %v3178_v14, %v536_v44  ;;  %v3367_v23 = vsub.s32 %v717_v35, %v720_v1  ;;  %v785_v17 = vor.u32 %v784_v59, %v783_v48 }
 0x125   : > { %v789_v24 = vshll.u32 %v2918_v55, %v774_v26  ;;  %v634_v43 = vand.u32 2147483647, %v633_v61  ;;  %vm792_vm7 = vcmp.lt.s32.totalorder %v773_v56, 1  ;;  %v808_v32 = vshll.u32 %v768_v54, 8 }
 0x126   : > { %v1283_v33 = vrot.slane %v415_v3, %v424_v6  ;;  %v723_v34 = vsub.s32 0, %v3367_v23  ;;  %v776_v0 = vshrl.u32 %v2914_v45, %v775_v36  ;;  %vm795_vm8 = vcmp.lt.s32.totalorder %v773_v56, 4 }
 0x127   : > { %v791_v39 = vor.u32 %v790_v21, %v789_v24  ;;  %2697 = vcosq.f32 %v539_v22  ;;  %v636_v38 = vcvt.s32.f32 %v629_v10  ;;  %v800_v13 = vsel %vm792_vm7, %v779_v12, %v782_v18 }
 0x128   : > { %v801_v35 = vsel %vm795_vm8, %v788_v20, 920167782  ;;  %2699 = vsinq.f32 %v539_v22  ;;  %v2515_v26 = vmin.u32 %v723_v34, %v3367_v23  ;;  %vm794_vm9 = vcmp.lt.s32.totalorder %v773_v56, 3 }
 0x129   : > { %v797_v46 = vsel %vm795_vm8, %v785_v17, 2102212464  ;;  %v637_v52 = vmul.f32 %v636_v38, %v634_v43  ;;  %vm793_vm10 = vcmp.lt.s32.totalorder %v773_v56, 2  ;;  %v802_v6 = vsel %vm794_vm9, %v785_v17, %v801_v35 }
 0x12a   : > { %v804_v37 = vsel %vm792_vm7, %v782_v18, %v785_v17  ;;  %v725_v36 = vclz %v2515_v26  ;;  %v796_v47 = vsel %vm792_vm7, %v776_v0, %v779_v12  ;;  %v803_v54 = vsel %vm793_vm10, %v800_v13, %v802_v6 }
 0x12b   : > { %v805_v60 = vsel %vm795_vm8, %v791_v39, 1326507024  ;;  %v798_v57 = vsel %vm794_vm9, %v782_v18, %v797_v46  ;;  %v3382_v25 = vmul.u32.u64.low %v808_v32, %v803_v54  ;;  %v3383_v30 = vmul.u32.u64.high %v808_v32, %v803_v54, %v3382_v25 }
 0x12c   : > { %v806_v58 = vsel %vm794_vm9, %v788_v20, %v805_v60  ;;  %v537_v59 = vsub.s32 4, %v3278_v31  ;;  %v2516_v44 = vadd.s32 4294967294, %v725_v36  ;;  %v3389_v63 = vmul.f32 %v3166_v8, %v1283_v33 }
 0x12d   : > { %v807_v61 = vsel %vm793_vm10, %v804_v37, %v806_v58  ;;  %v638_v28 = vxor.u32 2147483648, %v637_v52  ;;  %v799_v48 = vsel %vm793_vm10, %v796_v47, %v798_v57  ;;  %v1287_v12 = vrot.slane %v415_v3, %v428_v7 }
 0x12e   : > { %v3391_v10 = vmul.u32.u64.low %v808_v32, %v807_v61  ;;  %v3392_v1 = vmul.u32.u64.high %v808_v32, %v807_v61, %v3391_v10  ;;  %vm2517_vm11 = vcmp.lt.s32.totalorder %v2516_v44, 0  ;;  %v818_v18 = vadd.s32 1, %v3383_v30 }
 0x12f   : > { %v1291_v20 = vrot.slane %v415_v3, %v432_v9  ;;  %v538_v21 = vsel %vm453_vm5, %v537_v59, %v3278_v31  ;;  %vm556_vm12 = vcmp.lt.s32.totalorder %v3181_v15, 0  ;;  %v1295_v22 = vrot.slane %v415_v3, %v436_v29 }
 0x130   : > { %v1312_v56 = vand.u32 2139095040, %v3389_v63  ;;  %v639_v7 = vsel %vm556_vm12, %v638_v28, %v637_v52  ;;  %v728_v24 = vsel %vm2517_vm11, 0, %v2516_v44  ;;  %v815_v43 = vmul.u32 %v808_v32, %v799_v48 }
 0x131   : > { %v3407_v17 = vpop.eup %2697  ;;  %vm817_vm13 = vc.u32 %v3392_v1, %v3382_v25  ;;  %v640_v31 = vsub.s32 4, %v3297_v2  ;;  %v3418_v4 = vmul.f32 %v3166_v8, %v1287_v12  ;;  %v540_v29 = vsel %vm3357_vm6, 0, %v538_v21 }
 0x132   : > { %v3413_v9 = vpop.eup %2699  ;;  %v819_v33 = vsel %vm817_vm13, %v818_v18, %v3383_v30  ;;  %vm3424_vm14 = vcmp.le.f32.partialorder %v554_v19, 0.7853982  ;;  %v733_v0 = vsub.s32 4294967266, %v728_v24  ;;  %v1313_v39 = vshrl.u32 %v1312_v56, 23 }
 0x133   : > { %v820_v32 = vadd.s32 %v819_v33, %v815_v43  ;;  %v642_v34 = vsel %vm3424_vm14, %v3181_v15, %v639_v7  ;;  %v3432_v13 = vmul.f32 %v3166_v8, %v1291_v20  ;;  %v3435_v5 = vmul.f32 %v3166_v8, %v1295_v22 }
 0x134   : > { %v544_v35 = vand.u32 3, %v540_v29  ;;  %v641_v19 = vsel %vm556_vm12, %v640_v31, %v3297_v2  ;;  %v1309_v26 = vand.u32 2147483647, %v3389_v63  ;;  %v1412_v46 = vand.u32 2147483647, %v3418_v4 }
 0x135   : > { %v821_v38 = vadd.s32 536870912, %v820_v32  ;;  %v550_v52 = vxor.u32 2147483648, %v3407_v17  ;;  %2701 = vcosq.f32 %v642_v34  ;;  %v743_v6 = vsub.s32 4, %v3343_v41 }
 0x136   : > { %v547_v36 = vxor.u32 2147483648, %v3413_v9  ;;  %v729_v8 = vsub.s32 32, %v728_v24  ;;  %v734_v47 = vadd.s32 127, %v733_v0  ;;  %v2538_v54 = vadd.s32 4294967169, %v1313_v39 }
 0x137   : > { %v3444_v37 = vshrl.u32 %v821_v38, 30  ;;  %vm3449_vm15 = vcmp.le.f32.partialorder %v657_v42, 0.7853982  ;;  %vm659_vm0 = vcmp.lt.s32.totalorder %v3184_v16, 0  ;;  %v1415_v57 = vand.u32 2139095040, %v3418_v4 }
 0x138   : > { %vm549_vm1 = vcmp.eq.s32.totalorder %v544_v35, 2  ;;  %v643_v58 = vsel %vm3424_vm14, 0, %v641_v19  ;;  %v713_v30 = vadd.s32 %v3324_v11, %v3321_v40  ;;  %v956_v59 = vadd.s32 3, %v540_v29 }
 0x139   : > { %v823_v60 = vshll.u32 %v3444_v37, 30  ;;  %vm546_vm2 = vcmp.eq.s32.totalorder %v544_v35, 0  ;;  %v551_v42 = vsel %vm549_vm1, %v550_v52, %v3413_v9  ;;  %v744_v44 = vsel %vm659_vm0, %v743_v6, %v3343_v41 }
 0x13a   : > { %v548_v28 = vsel %vm546_vm2, %v3407_v17, %v547_v36  ;;  %v731_v10 = vshrl.u32 %v713_v30, %v729_v8  ;;  %v735_v48 = vshll.u32 %v734_v47, 23  ;;  %v1319_v12 = vadd.s32 1, %v2538_v54 }
 0x13b   : > { %v3464_v61 = vsub.s32 %v820_v32, %v823_v60  ;;  %vm545_vm3 = vcmp.lt.s32.totalorder %v544_v35, 2  ;;  %2703 = vsinq.f32 %v642_v34  ;;  %v3467_v18 = vand.u32 3, %v643_v58 }
 0x13c   : > { %v730_v11 = vshll.u32 %v3367_v23, %v728_v24  ;;  %v746_v20 = vsel %vm3449_vm15, 0, %v744_v44  ;;  %v957_v21 = vand.u32 3, %v956_v59  ;;  %vm1320_vm4 = vcmp.gt.s32.totalorder %v1319_v12, 0 }
 0x13d   : > { %v826_v40 = vsub.s32 0, %v3464_v61  ;;  %v552_v41 = vsel %vm545_vm3, %v548_v28, %v551_v42  ;;  %v3476_v56 = vand.u32 8388607, %v1309_v26  ;;  %v1416_v7 = vshrl.u32 %v1415_v57, 23 }
 0x13e   : > { %vm543_vm5 = vweird.f32 %v3178_v14  ;;  %v732_v43 = vor.u32 %v731_v10, %v730_v11  ;;  %v736_v31 = vor.u32 4788187, %v735_v48  ;;  %v1321_v33 = vsel %vm1320_vm4, %v1319_v12, 0 }
 0x13f   : > { %v2519_v22 = vmin.u32 %v826_v40, %v3464_v61  ;;  %v3479_v29 = vpop.eup %2701  ;;  %vm652_vm6 = vcmp.eq.s32.totalorder %v3467_v18, 2  ;;  %v3482_v23 = vand.u32 3, %v746_v20  ;;  %v1060_v24 = vadd.s32 3, %v643_v58 }
 0x140   : > { %v1323_v3 = vand.u32 31, %v1321_v33  ;;  %v3486_v32 = vsel %vm543_vm5, nan, %v552_v41  ;;  %vm958_vm7 = vcmp.lt.s32.totalorder %v957_v21, 2  ;;  %vm959_vm8 = vcmp.eq.s32.totalorder %v957_v21, 0 }
 0x141   : > { %v1164_v34 = vadd.s32 3, %v746_v20  ;;  %v828_v0 = vclz %v2519_v22  ;;  %v961_v39 = vsel %vm959_vm8, %v3407_v17, %v547_v36  ;;  %vm962_vm9 = vcmp.eq.s32.totalorder %v957_v21, 2 }
 0x142   : > { %v1324_v38 = vsub.s32 32, %v1323_v3  ;;  %v653_v35 = vxor.u32 2147483648, %v3479_v29  ;;  %v737_v19 = vand.u32 2147483647, %v736_v31  ;;  %v739_v6 = vcvt.s32.f32 %v732_v43 }
 0x143   : > { %v964_v8 = vsel %vm962_vm9, %v550_v52, %v3413_v9  ;;  %v1326_v47 = vshll.u32 %v2914_v45, %v1323_v3  ;;  %v1329_v60 = vshll.u32 %v2915_v49, %v1323_v3  ;;  %vm649_vm10 = vcmp.eq.s32.totalorder %v3467_v18, 0 }
 0x144   : > { %v1327_v54 = vshrl.u32 %v2915_v49, %v1324_v38  ;;  %v1330_v57 = vshrl.u32 %v2916_v51, %v1324_v38  ;;  %v1333_v17 = vshrl.u32 %v2917_v53, %v1324_v38  ;;  %v1335_v36 = vshll.u32 %v2917_v53, %v1323_v3 }
 0x145   : > { %v1336_v58 = vshrl.u32 %v2918_v55, %v1324_v38  ;;  %v1339_v30 = vshrl.u32 %v2919_v62, %v1324_v38  ;;  %v2704_v59 = vpop.eup %2703  ;;  %v2520_v9 = vadd.s32 4294967294, %v828_v0  ;;  %v1322_v52 = vshrl.u32 %v1321_v33, 5 }
 0x146   : > { %v1332_v42 = vshll.u32 %v2916_v51, %v1323_v3  ;;  %v1338_v44 = vshll.u32 %v2918_v55, %v1323_v3  ;;  %v740_v28 = vmul.f32 %v739_v6, %v737_v19  ;;  %v1328_v10 = vor.u32 %v1327_v54, %v1326_v47 }
 0x147   : > { %v1331_v48 = vor.u32 %v1330_v57, %v1329_v60  ;;  %v1337_v12 = vor.u32 %v1336_v58, %v1335_v36  ;;  %v3504_v40 = vadd.s32 %v3382_v25, %v3392_v1  ;;  %v1061_v11 = vand.u32 3, %v1060_v24 }
 0x148   : > { %v1334_v20 = vor.u32 %v1333_v17, %v1332_v42  ;;  %v1340_v41 = vor.u32 %v1339_v30, %v1338_v44  ;;  %v650_v22 = vxor.u32 2147483648, %v2704_v59  ;;  %v654_v43 = vsel %vm652_vm6, %v653_v35, %v2704_v59 }
 0x149   : > { %v965_v31 = vsel %vm958_vm7, %v961_v39, %v964_v8  ;;  %v3511_v33 = vand.u32 3, %v1164_v34  ;;  %vm648_vm11 = vcmp.lt.s32.totalorder %v3467_v18, 2  ;;  %vm2521_vm12 = vcmp.lt.s32.totalorder %v2520_v9, 0 }
 0x14a   : > { %v1317_v3 = vor.u32 8388608, %v3476_v56  ;;  %vm1341_vm13 = vcmp.lt.s32.totalorder %v1322_v52, 1  ;;  %vm1344_vm14 = vcmp.lt.s32.totalorder %v1322_v52, 4  ;;  %v741_v25 = vxor.u32 2147483648, %v740_v28 }
 0x14b   : > { %v1349_v1 = vsel %vm1341_vm13, %v1328_v10, %v1331_v48  ;;  %v1350_v24 = vsel %vm1344_vm14, %v1337_v12, 920167782  ;;  %v2542_v0 = vadd.s32 4294967169, %v1416_v7  ;;  %v1325_v19 = vshrl.u32 %v2914_v45, %v1324_v38 }
 0x14c   : > { %vm1343_vm1 = vcmp.lt.s32.totalorder %v1322_v52, 3  ;;  %v1346_v6 = vsel %vm1344_vm14, %v1334_v20, 2102212464  ;;  %v1354_v21 = vsel %vm1344_vm14, %v1340_v41, 1326507024  ;;  %vm646_vm2 = vweird.f32 %v3181_v15 }
 0x14d   : > { %v3518_v34 = vsel %vm2521_vm12, 0, %v2520_v9  ;;  %vm1342_vm3 = vcmp.lt.s32.totalorder %v1322_v52, 2  ;;  %v1351_v39 = vsel %vm1343_vm1, %v1334_v20, %v1350_v24  ;;  %v1353_v56 = vsel %vm1341_vm13, %v1331_v48, %v1334_v20 }
 0x14e   : > { %v651_v8 = vsel %vm649_vm10, %v3479_v29, %v650_v22  ;;  %vm1063_vm4 = vcmp.eq.s32.totalorder %v1061_v11, 0  ;;  %v1352_v7 = vsel %vm1342_vm3, %v1349_v1, %v1351_v39  ;;  %v1357_v47 = vshll.u32 %v1317_v3, 8 }
 0x14f   : > { %v742_v38 = vsel %vm659_vm0, %v741_v25, %v740_v28  ;;  %v1345_v54 = vsel %vm1341_vm13, %v1325_v19, %v1328_v10  ;;  %v1347_v60 = vsel %vm1343_vm1, %v1331_v48, %v1346_v6  ;;  %v1355_v57 = vsel %vm1343_vm1, %v1337_v12, %v1354_v21 }
 0x150   : > { %v836_v17 = vsub.s32 4294967266, %v3518_v34  ;;  %v1356_v36 = vsel %vm1342_vm3, %v1353_v56, %v1355_v57  ;;  %v3530_v58 = vmul.u32.u64.low %v1357_v47, %v1352_v7  ;;  %v3531_v30 = vmul.u32.u64.high %v1357_v47, %v1352_v7, %v3530_v58 }
 0x151   : > { %vm1066_vm6 = vcmp.eq.s32.totalorder %v1061_v11, 2  ;;  %v3534_v9 = vmul.u32.u64.low %v1357_v47, %v1356_v36  ;;  %v3535_v42 = vmul.u32.u64.high %v1357_v47, %v1356_v36, %v3534_v9  ;;  %v1422_v44 = vadd.s32 1, %v2542_v0 }
 0x152   : > { %vm1062_vm7 = vcmp.lt.s32.totalorder %v1061_v11, 2  ;;  %v1065_v28 = vsel %vm1063_vm4, %v3479_v29, %v650_v22  ;;  %v1068_v10 = vsel %vm1066_vm6, %v653_v35, %v2704_v59  ;;  %v1348_v48 = vsel %vm1342_vm3, %v1345_v54, %v1347_v60 }
 0x153   : > { %v655_v12 = vsel %vm648_vm11, %v651_v8, %v654_v43  ;;  %v745_v20 = vsel %vm3449_vm15, %v3184_v16, %v742_v38  ;;  %v3548_v41 = vsel %vm543_vm5, nan, %v965_v31  ;;  %vm1423_vm0 = vcmp.gt.s32.totalorder %v1422_v44, 0 }
 0x154   : > { %v837_v11 = vadd.s32 127, %v836_v17  ;;  %v1367_v22 = vadd.s32 1, %v3531_v30  ;;  %v1419_v29 = vand.u32 8388607, %v1412_v46  ;;  %v1424_v35 = vsel %vm1423_vm0, %v1422_v44, 0 }
 0x155   : > { %v846_v59 = vsub.s32 4, %v3444_v37  ;;  %v3554_v18 = vsel %vm1062_vm7, %v1065_v28, %v1068_v10  ;;  %v1364_v52 = vmul.u32 %v1357_v47, %v1348_v48  ;;  %vm1366_vm15 = vc.u32 %v3535_v42, %v3530_v58 }
 0x156   : > { %v3560_v14 = vsel %vm646_vm2, nan, %v655_v12  ;;  %2705 = vcosq.f32 %v745_v20  ;;  %v1368_v2 = vsel %vm1366_vm15, %v1367_v22, %v3531_v30  ;;  %v1426_v43 = vand.u32 31, %v1424_v35 }
 0x157   : > { %2707 = vsinq.f32 %v745_v20  ;;  %v832_v31 = vsub.s32 32, %v3518_v34  ;;  %v833_v3 = vshll.u32 %v3464_v61, %v3518_v34  ;;  %v1369_v25 = vadd.s32 %v1368_v2, %v1364_v52 }
 0x158   : > { %v838_v1 = vshll.u32 %v837_v11, 23  ;;  %v1420_v24 = vor.u32 8388608, %v1419_v29  ;;  %v3566_v0 = vshrl.u32 %v1424_v35, 5  ;;  %v1427_v19 = vsub.s32 32, %v1426_v43 }
 0x159   : > { %v1370_v6 = vadd.s32 536870912, %v1369_v25  ;;  %v1429_v21 = vshll.u32 %v2914_v45, %v1426_v43  ;;  %v1432_v39 = vshll.u32 %v2915_v49, %v1426_v43  ;;  %v1435_v56 = vshll.u32 %v2916_v51, %v1426_v43 }
 0x15a   : > { %vm762_vm5 = vcmp.lt.s32.totalorder %v3270_v27, 0  ;;  %v1430_v8 = vshrl.u32 %v2915_v49, %v1427_v19  ;;  %v1433_v7 = vshrl.u32 %v2916_v51, %v1427_v19  ;;  %v1436_v61 = vshrl.u32 %v2917_v53, %v1427_v19 }
 0x15b   : > { %v1438_v34 = vshll.u32 %v2917_v53, %v1426_v43  ;;  %v1371_v47 = vshrl.u32 %v1370_v6, 30  ;;  %v1439_v38 = vshrl.u32 %v2918_v55, %v1427_v19  ;;  %v1441_v54 = vshll.u32 %v2918_v55, %v1426_v43 }
 0x15c   : > { %v1442_v60 = vshrl.u32 %v2919_v62, %v1427_v19  ;;  %v1431_v57 = vor.u32 %v1430_v8, %v1429_v21  ;;  %v1434_v17 = vor.u32 %v1433_v7, %v1432_v39  ;;  %v1437_v36 = vor.u32 %v1436_v61, %v1435_v56 }
 0x15d   : > { %v1518_v30 = vand.u32 2139095040, %v3432_v13  ;;  %v1372_v9 = vshll.u32 %v1371_v47, 30  ;;  %v1440_v44 = vor.u32 %v1439_v38, %v1438_v34  ;;  %vm1444_vm8 = vcmp.lt.s32.totalorder %v3566_v0, 1 }
 0x15e   : > { %v1443_v28 = vor.u32 %v1442_v60, %v1441_v54  ;;  %v834_v10 = vshrl.u32 %v3504_v40, %v832_v31  ;;  %v839_v48 = vor.u32 4788187, %v838_v1  ;;  %vm1447_vm9 = vcmp.lt.s32.totalorder %v3566_v0, 4 }
 0x15f   : > { %v1452_v12 = vsel %vm1444_vm8, %v1431_v57, %v1434_v17  ;;  %vm1311_vm10 = vcmp.lt.s32.totalorder %v3389_v63, 0  ;;  %v3586_v20 = vsub.s32 %v1369_v25, %v1372_v9  ;;  %vm1446_vm11 = vcmp.lt.s32.totalorder %v3566_v0, 3 }
 0x160   : > { %v1453_v11 = vsel %vm1447_vm9, %v1440_v44, 920167782  ;;  %v1460_v22 = vshll.u32 %v1420_v24, 8  ;;  %v3591_v29 = vpop.eup %2705  ;;  %vm755_vm12 = vcmp.eq.s32.totalorder %v3482_v23, 2  ;;  %vm1445_vm13 = vcmp.lt.s32.totalorder %v3566_v0, 2 }
 0x161   : > { %v1454_v40 = vsel %vm1446_vm11, %v1437_v36, %v1453_v11  ;;  %v1457_v35 = vsel %vm1447_vm9, %v1443_v28, 1326507024  ;;  %v1519_v52 = vshrl.u32 %v1518_v30, 23  ;;  %v2708_v2 = vpop.eup %2707  ;;  %v1375_v43 = vsub.s32 0, %v3586_v20 }
 0x162   : > { %v1428_v31 = vshrl.u32 %v2914_v45, %v1427_v19  ;;  %v1449_v25 = vsel %vm1447_vm9, %v1437_v36, 2102212464  ;;  %v1455_v1 = vsel %vm1445_vm13, %v1452_v12, %v1454_v40  ;;  %vm3607_vm14 = vcmp.le.f32.partialorder %v1309_v26, 0.7853982 }
 0x163   : > { %v1456_v6 = vsel %vm1444_vm8, %v1434_v17, %v1437_v36  ;;  %v1458_v21 = vsel %vm1446_vm11, %v1440_v44, %v1457_v35  ;;  %v3615_v39 = vmul.u32.u64.low %v1460_v22, %v1455_v1  ;;  %v3616_v19 = vmul.u32.u64.high %v1460_v22, %v1455_v1, %v3615_v39 }
 0x164   : > { %v835_v56 = vor.u32 %v834_v10, %v833_v3  ;;  %v3624_v26 = vsel %vm762_vm5, %v846_v59, %v3444_v37  ;;  %v3629_v8 = vsel %vm646_vm2, nan, %v3554_v18  ;;  %v2539_v7 = vmin.u32 %v1375_v43, %v3586_v20 }
 0x165   : > { %v1395_v61 = vsub.s32 4, %v1371_v47  ;;  %v1448_v34 = vsel %vm1444_vm8, %v1428_v31, %v1431_v57  ;;  %v1450_v3 = vsel %vm1446_vm11, %v1434_v17, %v1449_v25  ;;  %v2546_v38 = vadd.s32 4294967169, %v1519_v52 }
 0x166   : > { %vm752_vm1 = vcmp.eq.s32.totalorder %v3482_v23, 0  ;;  %v756_v37 = vxor.u32 2147483648, %v3591_v29  ;;  %v840_v59 = vand.u32 2147483647, %v839_v48  ;;  %v1377_v54 = vclz %v2539_v7 }
 0x167   : > { %v1459_v15 = vsel %vm1445_vm13, %v1456_v6, %v1458_v21  ;;  %vm1167_vm2 = vcmp.eq.s32.totalorder %v3511_v33, 0  ;;  %vm1170_vm3 = vcmp.eq.s32.totalorder %v3511_v33, 2  ;;  %v842_v57 = vcvt.s32.f32 %v835_v56 }
 0x168   : > { %v3642_v18 = vmul.u32.u64.low %v1460_v22, %v1459_v15  ;;  %v3643_v60 = vmul.u32.u64.high %v1460_v22, %v1459_v15, %v3642_v18  ;;  %v2540_v36 = vadd.s32 4294967294, %v1377_v54  ;;  %v1451_v17 = vsel %vm1445_vm13, %v1448_v34, %v1450_v3 }
 0x169   : > { %v1470_v30 = vadd.s32 1, %v3616_v19  ;;  %v753_v9 = vxor.u32 2147483648, %v2708_v2  ;;  %v1396_v44 = vsel %vm1311_vm10, %v1395_v61, %v1371_v47  ;;  %v1515_v28 = vand.u32 2147483647, %v3432_v13 }
 0x16a   : > { %v1525_v10 = vadd.s32 1, %v2546_v38  ;;  %v3653_v48 = vsel %vm755_vm12, %v756_v37, %v2708_v2  ;;  %v3655_v12 = vmul.f32 %v842_v57, %v840_v59  ;;  %v1365_v11 = vadd.s32 %v3530_v58, %v3535_v42 }
 0x16b   : > { %vm2541_vm4 = vcmp.lt.s32.totalorder %v2540_v36, 0  ;;  %v1467_v40 = vmul.u32 %v1460_v22, %v1451_v17  ;;  %vm1469_vm6 = vc.u32 %v3643_v60, %v3615_v39  ;;  %v3663_v52 = vsel %vm3607_vm14, 0, %v1396_v44 }
 0x16c   : > { %v1380_v0 = vsel %vm2541_vm4, 0, %v2540_v36  ;;  %vm1526_vm7 = vcmp.gt.s32.totalorder %v1525_v10, 0  ;;  %v1471_v43 = vsel %vm1469_vm6, %v1470_v30, %v3616_v19  ;;  %v1522_v25 = vand.u32 8388607, %v1515_v28 }
 0x16d   : > { %v1381_v47 = vsub.s32 32, %v1380_v0  ;;  %v1385_v35 = vsub.s32 4294967266, %v1380_v0  ;;  %v1472_v31 = vadd.s32 %v1471_v43, %v1467_v40  ;;  %v1527_v58 = vsel %vm1526_vm7, %v1525_v10, 0 }
 0x16e   : > { %v1621_v42 = vand.u32 2139095040, %v3435_v5  ;;  %v1382_v22 = vshll.u32 %v3586_v20, %v1380_v0  ;;  %v1529_v21 = vand.u32 31, %v1527_v58  ;;  %v3673_v56 = vsel %vm752_vm1, %v3591_v29, %v753_v9 }
 0x16f   : > { %v1383_v1 = vshrl.u32 %v1365_v11, %v1381_v47  ;;  %v1386_v6 = vadd.s32 127, %v1385_v35  ;;  %v3678_v19 = vsel %vm1167_vm2, %v3591_v29, %v753_v9  ;;  %v3682_v7 = vsel %vm1170_vm3, %v756_v37, %v2708_v2 }
 0x170   : > { %v1473_v61 = vadd.s32 536870912, %v1472_v31  ;;  %v844_v20 = vxor.u32 2147483648, %v3655_v12  ;;  %v1530_v38 = vsub.s32 32, %v1529_v21  ;;  %v3686_v59 = vand.u32 3, %v3663_v52 }
 0x171   : > { %v1384_v34 = vor.u32 %v1383_v1, %v1382_v22  ;;  %v1387_v3 = vshll.u32 %v1386_v6, 23  ;;  %v1523_v15 = vor.u32 8388608, %v1522_v25  ;;  %v1618_v18 = vand.u32 2147483647, %v3435_v5 }
 0x172   : > { %v3688_v54 = vshrl.u32 %v1473_v61, 30  ;;  %v1532_v57 = vshll.u32 %v2914_v45, %v1529_v21  ;;  %v1533_v2 = vshrl.u32 %v2915_v49, %v1530_v38  ;;  %v1622_v37 = vshrl.u32 %v1621_v42, 23 }
 0x173   : > { %v1388_v29 = vor.u32 4788187, %v1387_v3  ;;  %v1535_v17 = vshll.u32 %v2915_v49, %v1529_v21  ;;  %v1536_v30 = vshrl.u32 %v2916_v51, %v1530_v38  ;;  %v1539_v9 = vshrl.u32 %v2917_v53, %v1530_v38 }
 0x174   : > { %v1475_v36 = vshll.u32 %v3688_v54, 30  ;;  %v1391_v10 = vcvt.s32.f32 %v1384_v34  ;;  %v1538_v11 = vshll.u32 %v2916_v51, %v1529_v21  ;;  %v1542_v0 = vshrl.u32 %v2918_v55, %v1530_v38 }
 0x175   : > { %v1389_v44 = vand.u32 2147483647, %v1388_v29  ;;  %v1528_v47 = vshrl.u32 %v1527_v58, 5  ;;  %v1534_v35 = vor.u32 %v1533_v2, %v1532_v57  ;;  %v1541_v43 = vshll.u32 %v2917_v53, %v1529_v21 }
 0x176   : > { %v3699_v40 = vsub.s32 %v1472_v31, %v1475_v36  ;;  %v1537_v42 = vor.u32 %v1536_v30, %v1535_v17  ;;  %v1540_v22 = vor.u32 %v1539_v9, %v1538_v11  ;;  %v1545_v1 = vshrl.u32 %v2919_v62, %v1530_v38 }
 0x177   : > { %v1392_v25 = vmul.f32 %v1391_v10, %v1389_v44  ;;  %vm1414_vm0 = vcmp.lt.s32.totalorder %v3418_v4, 0  ;;  %v1543_v61 = vor.u32 %v1542_v0, %v1541_v43  ;;  %v1544_v34 = vshll.u32 %v2918_v55, %v1529_v21 }
 0x178   : > { %v1478_v6 = vsub.s32 0, %v3699_v40  ;;  %v3706_v3 = vshll.u32 %v1523_v15, 8  ;;  %v1498_v58 = vsub.s32 4, %v3688_v54  ;;  %v1531_v29 = vshrl.u32 %v2914_v45, %v1530_v38 }
 0x179   : > { %v1393_v31 = vxor.u32 2147483648, %v1392_v25  ;;  %v2550_v57 = vadd.s32 4294967169, %v1622_v37  ;;  %v1546_v36 = vor.u32 %v1545_v1, %v1544_v34  ;;  %vm1547_vm15 = vcmp.lt.s32.totalorder %v1528_v47, 1 }
 0x17a   : > { %v2543_v2 = vmin.u32 %v1478_v6, %v3699_v40  ;;  %vm1550_vm8 = vcmp.lt.s32.totalorder %v1528_v47, 4  ;;  %vm1548_vm9 = vcmp.lt.s32.totalorder %v1528_v47, 2  ;;  %v1555_v21 = vsel %vm1547_vm15, %v1534_v35, %v1537_v42 }
 0x17b   : > { %v1394_v17 = vsel %vm1311_vm10, %v1393_v31, %v1392_v25  ;;  %v1552_v30 = vsel %vm1550_vm8, %v1540_v22, 2102212464  ;;  %vm751_vm11 = vcmp.lt.s32.totalorder %v3482_v23, 2  ;;  %vm3720_vm12 = vcmp.le.f32.partialorder %v1412_v46, 0.7853982 }
 0x17c   : > { %v1397_v15 = vsel %vm3607_vm14, %v3389_v63, %v1394_v17  ;;  %v1480_v37 = vclz %v2543_v2  ;;  %vm1549_vm13 = vcmp.lt.s32.totalorder %v1528_v47, 3  ;;  %v1556_v9 = vsel %vm1550_vm8, %v1543_v61, 920167782 }
 0x17d   : > { %v1551_v44 = vsel %vm1547_vm15, %v1531_v29, %v1534_v35  ;;  %v1553_v10 = vsel %vm1549_vm13, %v1537_v42, %v1552_v30  ;;  %v1557_v11 = vsel %vm1549_vm13, %v1540_v22, %v1556_v9  ;;  %v1559_v0 = vsel %vm1547_vm15, %v1537_v42, %v1540_v22 }
 0x17e   : > { %2709 = vcosq.f32 %v1397_v15  ;;  %v2544_v43 = vadd.s32 4294967294, %v1480_v37  ;;  %v1558_v25 = vsel %vm1548_vm9, %v1555_v21, %v1557_v11  ;;  %v1560_v24 = vsel %vm1550_vm8, %v1546_v36, 1326507024 }
 0x17f   : > { %2711 = vsinq.f32 %v1397_v15  ;;  %v1561_v1 = vsel %vm1549_vm13, %v1543_v61, %v1560_v24  ;;  %v3728_v46 = vmul.u32.u64.low %v3706_v3, %v1558_v25  ;;  %v3729_v6 = vmul.u32.u64.high %v3706_v3, %v1558_v25, %v3728_v46 }
 0x180   : > { %v1468_v34 = vadd.s32 %v3615_v39, %v3643_v60  ;;  %vm2545_vm10 = vcmp.lt.s32.totalorder %v2544_v43, 0  ;;  %v1562_v35 = vsel %vm1548_vm9, %v1559_v0, %v1561_v1  ;;  %v1628_v42 = vadd.s32 1, %v2550_v57 }
 0x181   : > { %v1483_v22 = vsel %vm2545_vm10, 0, %v2544_v43  ;;  %v1499_v31 = vsel %vm1414_vm0, %v1498_v58, %v3688_v54  ;;  %v3739_v29 = vmul.u32.u64.low %v3706_v3, %v1562_v35  ;;  %v3740_v61 = vmul.u32.u64.high %v3706_v3, %v1562_v35, %v3739_v29 }
 0x182   : > { %v1484_v2 = vsub.s32 32, %v1483_v22  ;;  %v1488_v36 = vsub.s32 4294967266, %v1483_v22  ;;  %v1554_v17 = vsel %vm1548_vm9, %v1551_v44, %v1553_v10  ;;  %vm1629_vm14 = vcmp.gt.s32.totalorder %v1628_v42, 0 }
 0x183   : > { %v1573_v39 = vadd.s32 1, %v3729_v6  ;;  %v1625_v60 = vand.u32 8388607, %v1618_v18  ;;  %v1630_v57 = vsel %vm1629_vm14, %v1628_v42, 0  ;;  %v1814_v30 = vadd.s32 3, %v3663_v52 }
 0x184   : > { %v1485_v21 = vshll.u32 %v3699_v40, %v1483_v22  ;;  %v1486_v54 = vshrl.u32 %v1468_v34, %v1484_v2  ;;  %v1489_v58 = vadd.s32 127, %v1488_v36  ;;  %v1632_v15 = vand.u32 31, %v1630_v57 }
 0x185   : > { %v3752_v47 = vsel %vm751_vm11, %v3673_v56, %v3653_v48  ;;  %v1501_v37 = vsel %vm3720_vm12, 0, %v1499_v31  ;;  %v1570_v9 = vmul.u32 %v3706_v3, %v1554_v17  ;;  %vm1572_vm1 = vc.u32 %v3740_v61, %v3728_v46 }
 0x186   : > { %v1487_v52 = vor.u32 %v1486_v54, %v1485_v21  ;;  %v1490_v44 = vshll.u32 %v1489_v58, 23  ;;  %v1574_v40 = vsel %vm1572_vm1, %v1573_v39, %v3729_v6  ;;  %v1633_v10 = vsub.s32 32, %v1632_v15 }
 0x187   : > { %v3765_v23 = vsel %vm762_vm5, %v844_v20, %v3655_v12  ;;  %vm1404_vm2 = vcmp.eq.s32.totalorder %v3686_v59, 0  ;;  %vm1407_vm3 = vcmp.eq.s32.totalorder %v3686_v59, 2  ;;  %v1575_v48 = vadd.s32 %v1574_v40, %v1570_v9 }
 0x188   : > { %v3769_v56 = vpop.eup %2709  ;;  %v1491_v3 = vor.u32 4788187, %v1490_v44  ;;  %v3771_v11 = vand.u32 3, %v1501_v37  ;;  %v1626_v0 = vor.u32 8388608, %v1625_v60  ;;  %v3773_v43 = vand.u32 3, %v1814_v30 }
 0x189   : > { %v3775_v25 = vpop.eup %2711  ;;  %v1576_v24 = vadd.s32 536870912, %v1575_v48  ;;  %v3777_v1 = vshrl.u32 %v1630_v57, 5  ;;  %v1636_v12 = vshrl.u32 %v2915_v49, %v1633_v10  ;;  %v1639_v20 = vshrl.u32 %v2916_v51, %v1633_v10 }
 0x18a   : > { %vm1403_vm5 = vcmp.lt.s32.totalorder %v3686_v59, 2  ;;  %v1492_v6 = vand.u32 2147483647, %v1491_v3  ;;  %v1494_v34 = vcvt.s32.f32 %v1487_v52  ;;  %v1635_v35 = vshll.u32 %v2914_v45, %v1632_v15 }
 0x18b   : > { %v1642_v42 = vshrl.u32 %v2917_v53, %v1633_v10  ;;  %v1408_v22 = vxor.u32 2147483648, %v3769_v56  ;;  %v3785_v31 = vshrl.u32 %v1576_v24, 30  ;;  %v1638_v29 = vshll.u32 %v2915_v49, %v1632_v15 }
 0x18c   : > { %v1641_v2 = vshll.u32 %v2916_v51, %v1632_v15  ;;  %v1405_v36 = vxor.u32 2147483648, %v3775_v25  ;;  %v1495_v17 = vmul.f32 %v1494_v34, %v1492_v6  ;;  %v1644_v39 = vshll.u32 %v2917_v53, %v1632_v15 }
 0x18d   : > { %v1645_v60 = vshrl.u32 %v2918_v55, %v1633_v10  ;;  %v1578_v57 = vshll.u32 %v3785_v31, 30  ;;  %v1637_v30 = vor.u32 %v1636_v12, %v1635_v35  ;;  %v1640_v21 = vor.u32 %v1639_v20, %v1638_v29 }
 0x18e   : > { %v3793_v54 = vshll.u32 %v1626_v0, 8  ;;  %v1496_v58 = vxor.u32 2147483648, %v1495_v17  ;;  %v1643_v9 = vor.u32 %v1642_v42, %v1641_v2  ;;  %v1648_v49 = vshrl.u32 %v2919_v62, %v1633_v10 }
 0x18f   : > { %v1646_v52 = vor.u32 %v1645_v60, %v1644_v39  ;;  %vm1817_vm4 = vcmp.eq.s32.totalorder %v3773_v43, 0  ;;  %vm1820_vm6 = vcmp.eq.s32.totalorder %v3773_v43, 2  ;;  %v3798_v51 = vsub.s32 %v1575_v48, %v1578_v57 }
 0x190   : > { %v1634_v53 = vshrl.u32 %v2914_v45, %v1633_v10  ;;  %v1647_v44 = vshll.u32 %v2918_v55, %v1632_v15  ;;  %v1918_v40 = vadd.s32 3, %v1501_v37  ;;  %vm1401_vm7 = vweird.f32 %v3389_v63 }
 0x191   : > { %v1406_v3 = vsel %vm1404_vm2, %v3769_v56, %v1405_v36  ;;  %v1409_v62 = vsel %vm1407_vm3, %v1408_v22, %v3775_v25  ;;  %v1497_v0 = vsel %vm1414_vm0, %v1496_v58, %v1495_v17  ;;  %vm1650_vm15 = vcmp.lt.s32.totalorder %v3777_v1, 1 }
 0x192   : > { %v1500_v45 = vsel %vm3720_vm12, %v3418_v4, %v1497_v0  ;;  %v1581_v55 = vsub.s32 0, %v3798_v51  ;;  %v1649_v15 = vor.u32 %v1648_v49, %v1647_v44  ;;  %vm1653_vm8 = vcmp.lt.s32.totalorder %v3777_v1, 4 }
 0x193   : > { %2713 = vcosq.f32 %v1500_v45  ;;  %vm1517_vm9 = vcmp.lt.s32.totalorder %v3432_v13, 0  ;;  %v1655_v37 = vsel %vm1653_vm8, %v1643_v9, 2102212464  ;;  %v1658_v10 = vsel %vm1650_vm15, %v1637_v30, %v1640_v21 }
 0x194   : > { %v1659_v48 = vsel %vm1653_vm8, %v1646_v52, 920167782  ;;  %v1410_v38 = vsel %vm1403_vm5, %v1406_v3, %v1409_v62  ;;  %2715 = vsinq.f32 %v1500_v45  ;;  %v2547_v24 = vmin.u32 %v1581_v55, %v3798_v51 }
 0x195   : > { %vm1652_vm0 = vcmp.lt.s32.totalorder %v3777_v1, 3  ;;  %vm1651_vm11 = vcmp.lt.s32.totalorder %v3777_v1, 2  ;;  %v1654_v12 = vsel %vm1650_vm15, %v1634_v53, %v1637_v30  ;;  %v1662_v6 = vsel %vm1650_vm15, %v1640_v21, %v1643_v9 }
 0x196   : > { %v1660_v20 = vsel %vm1652_vm0, %v1643_v9, %v1659_v48  ;;  %v1583_v34 = vclz %v2547_v24  ;;  %v1656_v35 = vsel %vm1652_vm0, %v1640_v21, %v1655_v37  ;;  %v1663_v42 = vsel %vm1653_vm8, %v1649_v15, 1326507024 }
 0x197   : > { %v1661_v59 = vsel %vm1651_vm11, %v1658_v10, %v1660_v20  ;;  %v1601_v29 = vsub.s32 4, %v3785_v31  ;;  %v1664_v2 = vsel %vm1652_vm0, %v1646_v52, %v1663_v42  ;;  %vm1507_vm12 = vcmp.eq.s32.totalorder %v3771_v11, 0  ;;  %v2145_v10 = vld [vmem:[%s3138_s12 + $0x40] sm:$0xff] }
 0x198   : > { %v3839_v17 = vmul.u32.u64.low %v3793_v54, %v1661_v59  ;;  %v3840_v39 = vmul.u32.u64.high %v3793_v54, %v1661_v59, %v3839_v17  ;;  %v2548_v60 = vadd.s32 4294967294, %v1583_v34  ;;  %v1665_v57 = vsel %vm1651_vm11, %v1662_v6, %v1664_v2  ;;  %v2142_v34 = vld [vmem:[%s3138_s12 + $0x28] sm:$0xff] }
 0x199   : > { %v1819_v30 = vsel %vm1817_vm4, %v3769_v56, %v1405_v36  ;;  %v1822_v21 = vsel %vm1820_vm6, %v1408_v22, %v3775_v25  ;;  %vm1506_vm13 = vcmp.lt.s32.totalorder %v3771_v11, 2  ;;  %v1657_v58 = vsel %vm1651_vm11, %v1654_v12, %v1656_v35  ;;  %v2141_v25 = vld [vmem:[%s3138_s12 + $0x20] sm:$0xff]  ;;  %v2146_v35 = vld [vmem:[%s3138_s12 + $0x48] sm:$0xff] }
 0x19a   : > { %v3856_v9 = vmul.u32.u64.low %v3793_v54, %v1665_v57  ;;  %v3857_v52 = vmul.u32.u64.high %v3793_v54, %v1665_v57, %v3856_v9  ;;  %vm1816_vm10 = vcmp.lt.s32.totalorder %v3773_v43, 2  ;;  %v3862_v49 = vsel %vm1401_vm7, nan, %v1410_v38 }
 0x19b   : > { %vm1504_vm14 = vweird.f32 %v3418_v4  ;;  %vm1510_vm1 = vcmp.eq.s32.totalorder %v3771_v11, 2  ;;  %vm2549_vm2 = vcmp.lt.s32.totalorder %v2548_v60, 0  ;;  %v1823_v56 = vsel %vm1816_vm10, %v1819_v30, %v1822_v21 }
 0x19c   : > { %v1571_v1 = vadd.s32 %v3728_v46, %v3740_v61  ;;  %v1586_v22 = vsel %vm2549_vm2, 0, %v2548_v60  ;;  %v1676_v36 = vadd.s32 1, %v3840_v39  ;;  %v1919_v53 = vand.u32 3, %v1918_v40 }
 0x19d   : > { %v1587_v44 = vsub.s32 32, %v1586_v22  ;;  %v1591_v43 = vsub.s32 4294967266, %v1586_v22  ;;  %v1602_v3 = vsel %vm1517_vm9, %v1601_v29, %v3785_v31  ;;  %v1673_v62 = vmul.u32 %v3793_v54, %v1657_v58  ;;  %v2714_v0 = vpop.eup %2713 }
 0x19e   : > { %v1588_v45 = vshll.u32 %v3798_v51, %v1586_v22  ;;  %vm1675_vm3 = vc.u32 %v3857_v52, %v3839_v17  ;;  %v3879_v46 = vsel %vm1401_vm7, nan, %v1823_v56  ;;  %v2149_v61 = vmul.f32 %v2141_v25, %v3862_v49  ;;  %v2716_v40 = vpop.eup %2715  ;;  %v2137_v22 = vld [vmem:[%s3138_s12] sm:$0xff] }
 0x19f   : > { %vm1166_vm5 = vcmp.lt.s32.totalorder %v3511_v33, 2  ;;  %v1511_v55 = vxor.u32 2147483648, %v2714_v0  ;;  %v1589_v31 = vshrl.u32 %v1571_v1, %v1587_v44  ;;  %v1592_v15 = vadd.s32 127, %v1591_v43  ;;  %v2138_v44 = vld [vmem:[%s3138_s12 + $0x8] sm:$0xff]  ;;  %v2209_v56 = vld [vmem:[%s3146_s17] sm:$0xff] }
 0x1a0   : > { %v1677_v54 = vsel %vm1675_vm3, %v1676_v36, %v3840_v39  ;;  %vm3886_vm4 = vcmp.le.f32.partialorder %v760_v50, 0.7853982  ;;  %v1508_v63 = vxor.u32 2147483648, %v2716_v40  ;;  %vm1921_vm6 = vcmp.eq.s32.totalorder %v1919_v53, 0 }
 0x1a1   : > { %v1678_v37 = vadd.s32 %v1677_v54, %v1673_v62  ;;  %vm1924_vm7 = vcmp.eq.s32.totalorder %v1919_v53, 2  ;;  %vm749_vm15 = vweird.f32 %v3184_v16  ;;  %v1512_v48 = vsel %vm1510_vm1, %v1511_v55, %v2716_v40 }
 0x1a2   : > { %v1590_v38 = vor.u32 %v1589_v31, %v1588_v45  ;;  %v1593_v24 = vshll.u32 %v1592_v15, 23  ;;  %v1926_v12 = vsel %vm1924_vm7, %v1511_v55, %v2716_v40  ;;  %v1509_v50 = vsel %vm1507_vm12, %v2714_v0, %v1508_v63 }
 0x1a3   : > { %v1679_v20 = vadd.s32 536870912, %v1678_v37  ;;  %vm1920_vm8 = vcmp.lt.s32.totalorder %v1919_v53, 2  ;;  %v1923_v6 = vsel %vm1921_vm6, %v2714_v0, %v1508_v63  ;;  %v1513_v59 = vsel %vm1506_vm13, %v1509_v50, %v1512_v48 }
 0x1a4   : > { %v1594_v42 = vor.u32 4788187, %v1593_v24  ;;  %v1927_v29 = vsel %vm1920_vm8, %v1923_v6, %v1926_v12  ;;  %v2153_v2 = vmul.f32 %v2145_v10, %v3879_v46  ;;  %v3903_v39 = vsel %vm1504_vm14, nan, %v1513_v59  ;;  %v2213_v24 = vld [vmem:[%s3146_s17 + $0x20] sm:$0xff] }
 0x1a5   : > { %v1597_v60 = vcvt.s32.f32 %v1590_v38  ;;  %v3905_v57 = vshrl.u32 %v1679_v20, 30  ;;  %v3909_v30 = vsel %vm1504_vm14, nan, %v1927_v29  ;;  %v2150_v11 = vmul.f32 %v2142_v34, %v3903_v39  ;;  %v2214_v20 = vld [vmem:[%s3146_s17 + $0x28] sm:$0xff]  ;;  %v2217_v6 = vld [vmem:[%s3146_s17 + $0x40] sm:$0xff] }
 0x1a6   : > { %v1595_v21 = vand.u32 2147483647, %v1594_v42  ;;  %v2154_v58 = vmul.f32 %v2146_v35, %v3909_v30  ;;  %v2161_v9 = vmul.f32 %v2141_v25, %v3879_v46  ;;  %vm3916_vm0 = vcmp.le.f32.partialorder %v1515_v28, 0.7853982 }
 0x1a7   : > { %v1681_v1 = vshll.u32 %v3905_v57, 30  ;;  %v2162_v4 = vmul.f32 %v2142_v34, %v3909_v30  ;;  %v2165_v36 = vmul.f32 %v2145_v10, %v3862_v49  ;;  %v2157_v43 = vsub.f32 %v2149_v61, %v2153_v2  ;;  %v2218_v34 = vld [vmem:[%s3146_s17 + $0x48] sm:$0xff] }
 0x1a8   : > { %v1598_v53 = vmul.f32 %v1597_v60, %v1595_v21  ;;  %v2158_v62 = vsub.f32 %v2150_v11, %v2154_v58  ;;  %v2166_v25 = vmul.f32 %v2146_v35, %v3903_v39  ;;  %v1173_v28 = vsel %vm1166_vm5, %v3678_v19, %v3682_v7 }
 0x1a9   : > { %v1604_v0 = vsel %vm3916_vm0, 0, %v1602_v3  ;;  %v3932_v45 = vsub.s32 %v1678_v37, %v1681_v1  ;;  %v2169_v40 = vadd.f32 %v2165_v36, %v2161_v9  ;;  %v848_v55 = vsel %vm3886_vm4, %v3270_v27, %v3765_v23  ;;  %v2210_v1 = vld [vmem:[%s3146_s17 + $0x8] sm:$0xff] }
 0x1aa   : > { %v1599_v61 = vxor.u32 2147483648, %v1598_v53  ;;  %v2170_v31 = vadd.f32 %v2166_v25, %v2162_v4  ;;  %v2173_v15 = vmul.f32 %v2137_v22, %v3486_v32  ;;  %v3942_v33 = vsel %vm749_vm15, nan, %v3752_v47 }
 0x1ab   : > { %v3947_v19 = vsel %vm3886_vm4, 0, %v3624_v26  ;;  %v1684_v7 = vsub.s32 0, %v3932_v45  ;;  %v2174_v3 = vmul.f32 %v2138_v44, %v3560_v14  ;;  %2205 = vst [vmem:[%s3952_s15 + $0x40] sm:$0xff] %v2169_v40  ;;  %v2022_v47 = vadd.s32 3, %v1604_v0 }
 0x1ac   : > { %v1600_v23 = vsel %vm1517_vm9, %v1599_v61, %v1598_v53  ;;  %v2177_v54 = vmul.f32 %v2157_v43, %v3548_v41  ;;  %v2178_v26 = vmul.f32 %v2158_v62, %v3629_v8  ;;  %2206 = vst [vmem:[%s3952_s15 + $0x48] sm:$0xff] %v2170_v31  ;;  %2717 = vcosq.f32 %v848_v55 }
 0x1ad   : > { %v3962_v51 = vsel %vm749_vm15, nan, %v1173_v28  ;;  %v1603_v63 = vsel %vm3916_vm0, %v3432_v13, %v1600_v23  ;;  %v2551_v37 = vmin.u32 %v1684_v7, %v3932_v45  ;;  %v3968_v10 = vand.u32 3, %v1604_v0 }
 0x1ae   : > { %2719 = vcosq.f32 %v1603_v63  ;;  %v2181_v48 = vsub.f32 %v2173_v15, %v2177_v54  ;;  %v2185_v38 = vmul.f32 %v2137_v22, %v3548_v41  ;;  %v2182_v16 = vsub.f32 %v2174_v3, %v2178_v26 }
 0x1af   : > { %2721 = vsinq.f32 %v1603_v63  ;;  %v1686_v12 = vclz %v2551_v37  ;;  %v2186_v50 = vmul.f32 %v2138_v44, %v3629_v8  ;;  %vm1620_vm9 = vcmp.lt.s32.totalorder %v3435_v5, 0 }
 0x1b0   : > { %2723 = vsinq.f32 %v848_v55  ;;  %v1674_v35 = vadd.s32 %v3839_v17, %v3857_v52  ;;  %v3979_v59 = vand.u32 3, %v2022_v47  ;;  %2197 = vst [vmem:[%s3952_s15] sm:$0xff] %v2181_v48  ;;  %v1704_v29 = vsub.s32 4, %v3905_v57  ;;  %2198 = vst [vmem:[%s3952_s15 + $0x8] sm:$0xff] %v2182_v16 }
 0x1b1   : > { %v2552_v42 = vadd.s32 4294967294, %v1686_v12  ;;  %v2189_v2 = vmul.f32 %v2157_v43, %v3486_v32  ;;  %v2190_v60 = vmul.f32 %v2158_v62, %v3560_v14  ;;  %vm1613_vm11 = vcmp.eq.s32.totalorder %v3968_v10, 2 }
 0x1b2   : > { %v2221_v21 = vmul.f32 %v2213_v24, %v3862_v49  ;;  %v2222_v11 = vmul.f32 %v2214_v20, %v3903_v39  ;;  %v2225_v17 = vmul.f32 %v2217_v6, %v3879_v46  ;;  %v2226_v52 = vmul.f32 %v2218_v34, %v3909_v30 }
 0x1b3   : > { %vm1610_vm12 = vcmp.eq.s32.totalorder %v3968_v10, 0  ;;  %vm2553_vm13 = vcmp.lt.s32.totalorder %v2552_v42, 0  ;;  %v2193_v58 = vadd.f32 %v2189_v2, %v2185_v38  ;;  %v2194_v9 = vadd.f32 %v2190_v60, %v2186_v50 }
 0x1b4   : > { %v2233_v22 = vmul.f32 %v2213_v24, %v3879_v46  ;;  %vm1609_vm10 = vcmp.lt.s32.totalorder %v3968_v10, 2  ;;  %v1689_v4 = vsel %vm2553_vm13, 0, %v2552_v42  ;;  %vm2024_vm14 = vcmp.lt.s32.totalorder %v3979_v59, 2  ;;  %v2139_v46 = vld [vmem:[%s3138_s12 + $0x10] sm:$0xff] }
 0x1b5   : > { %v2229_v36 = vsub.f32 %v2221_v21, %v2225_v17  ;;  %v2230_v53 = vsub.f32 %v2222_v11, %v2226_v52  ;;  %v2234_v44 = vmul.f32 %v2214_v20, %v3909_v30  ;;  %vm1607_vm1 = vweird.f32 %v3432_v13  ;;  %2201 = vst [vmem:[%s3952_s15 + $0x20] sm:$0xff] %v2193_v58  ;;  %2202 = vst [vmem:[%s3952_s15 + $0x28] sm:$0xff] %v2194_v9  ;;  %v2143_v42 = vld [vmem:[%s3138_s12 + $0x30] sm:$0xff] }
 0x1b6   : > { %v1690_v43 = vsub.s32 32, %v1689_v4  ;;  %v1694_v62 = vsub.s32 4294967266, %v1689_v4  ;;  %vm2025_vm2 = vcmp.eq.s32.totalorder %v3979_v59, 0  ;;  %v2237_v25 = vmul.f32 %v2217_v6, %v3862_v49  ;;  %v4008_v30 = vpop.eup %2717  ;;  %v2215_v21 = vld [vmem:[%s3146_s17 + $0x30] sm:$0xff] }
 0x1b7   : > { %vm2028_vm3 = vcmp.eq.s32.totalorder %v3979_v59, 2  ;;  %v2238_v28 = vmul.f32 %v2218_v34, %v3903_v39  ;;  %v2245_v0 = vmul.f32 %v2209_v56, %v3486_v32  ;;  %v2246_v40 = vmul.f32 %v2210_v1, %v3560_v14  ;;  %v2219_v11 = vld [vmem:[%s3146_s17 + $0x50] sm:$0xff] }
 0x1b8   : > { %v1691_v55 = vshll.u32 %v3932_v45, %v1689_v4  ;;  %v1692_v61 = vshrl.u32 %v1674_v35, %v1690_v43  ;;  %v1695_v31 = vadd.s32 127, %v1694_v62  ;;  %v2241_v15 = vadd.f32 %v2237_v25, %v2233_v22  ;;  %v2720_v7 = vpop.eup %2719  ;;  %v2211_v59 = vld [vmem:[%s3146_s17 + $0x10] sm:$0xff] }
 0x1b9   : > { %v4014_v49 = vsel %vm1620_vm9, %v1704_v29, %v3905_v57  ;;  %v2242_v3 = vadd.f32 %v2238_v28, %v2234_v44  ;;  %v2249_v39 = vmul.f32 %v2229_v36, %v3548_v41  ;;  %v2250_v23 = vmul.f32 %v2230_v53, %v3629_v8  ;;  %v2722_v47 = vpop.eup %2721  ;;  %v2147_v29 = vld [vmem:[%s3138_s12 + $0x50] sm:$0xff] }
 0x1ba   : > { %v1614_v54 = vxor.u32 2147483648, %v2720_v7  ;;  %v1693_v26 = vor.u32 %v1692_v61, %v1691_v55  ;;  %v1696_v63 = vshll.u32 %v1695_v31, 23  ;;  %v4019_v45 = vmul.f32 %v2139_v46, %v3942_v33  ;;  %2277 = vst [vmem:[%s4022_s11 + $0x40] sm:$0xff] %v2241_v15  ;;  %v4025_v57 = vpop.eup %2723 }
 0x1bb   : > { %v1611_v37 = vxor.u32 2147483648, %v2722_v47  ;;  %v2253_v48 = vsub.f32 %v2245_v0, %v2249_v39  ;;  %v2254_v38 = vsub.f32 %v2246_v40, %v2250_v23  ;;  %v2257_v24 = vmul.f32 %v2209_v56, %v3548_v41  ;;  %2278 = vst [vmem:[%s4022_s11 + $0x48] sm:$0xff] %v2242_v3 }
 0x1bc   : > { %v1615_v12 = vsel %vm1613_vm11, %v1614_v54, %v2722_v47  ;;  %vm4033_vm5 = vcmp.le.f32.partialorder %v1618_v18, 0.7853982  ;;  %v1697_v50 = vor.u32 4788187, %v1696_v63  ;;  %v2030_v20 = vsel %vm2028_vm3, %v1614_v54, %v2722_v47 }
 0x1bd   : > { %v2258_v6 = vmul.f32 %v2210_v1, %v3629_v8  ;;  %v1612_v41 = vsel %vm1610_vm12, %v2720_v7, %v1611_v37  ;;  %v1700_v34 = vcvt.s32.f32 %v1693_v26  ;;  %v2027_v35 = vsel %vm2025_vm2, %v2720_v7, %v1611_v37  ;;  %2269 = vst [vmem:[%s4022_s11] sm:$0xff] %v2253_v48  ;;  %2270 = vst [vmem:[%s4022_s11 + $0x8] sm:$0xff] %v2254_v38 }
 0x1be   : > { %v2261_v18 = vmul.f32 %v2229_v36, %v3486_v32  ;;  %v1616_v2 = vsel %vm1609_vm10, %v1612_v41, %v1615_v12  ;;  %v1698_v60 = vand.u32 2147483647, %v1697_v50  ;;  %v2031_v8 = vsel %vm2024_vm14, %v2027_v35, %v2030_v20 }
 0x1bf   : > { %v2262_v17 = vmul.f32 %v2230_v53, %v3560_v14  ;;  %v1617_v52 = vsel %vm1607_vm1, nan, %v1616_v2  ;;  %v2032_v32 = vsel %vm1607_vm1, nan, %v2031_v8  ;;  %v2187_v58 = vmul.f32 %v2139_v46, %v3962_v51  ;;  %v2148_v2 = vld [vmem:[%s3138_s12 + $0x58] sm:$0xff] }
 0x1c0   : > { %v2265_v9 = vadd.f32 %v2261_v18, %v2257_v24  ;;  %v1701_v10 = vmul.f32 %v1700_v34, %v1698_v60  ;;  %v2151_v56 = vmul.f32 %v2143_v42, %v1617_v52  ;;  %v2155_v1 = vmul.f32 %v2147_v29, %v2032_v32  ;;  %v2144_v18 = vld [vmem:[%s3138_s12 + $0x38] sm:$0xff] }
 0x1c1   : > { %v2163_v22 = vmul.f32 %v2143_v42, %v2032_v32  ;;  %v2167_v4 = vmul.f32 %v2147_v29, %v1617_v52  ;;  %v2223_v36 = vmul.f32 %v2215_v21, %v1617_v52  ;;  %v2227_v44 = vmul.f32 %v2219_v11, %v2032_v32 }
 0x1c2   : > { %v2235_v43 = vmul.f32 %v2215_v21, %v2032_v32  ;;  %2273 = vst [vmem:[%s4022_s11 + $0x20] sm:$0xff] %v2265_v9  ;;  %v1702_v14 = vxor.u32 2147483648, %v1701_v10  ;;  %v2159_v53 = vsub.f32 %v2151_v56, %v2155_v1  ;;  %v2239_v62 = vmul.f32 %v2219_v11, %v1617_v52  ;;  %v2216_v21 = vld [vmem:[%s3146_s17 + $0x38] sm:$0xff] }
 0x1c3   : > { %v2266_v13 = vadd.f32 %v2262_v17, %v2258_v6  ;;  %v2171_v25 = vadd.f32 %v2167_v4, %v2163_v22  ;;  %v2231_v28 = vsub.f32 %v2223_v36, %v2227_v44  ;;  %v2247_v46 = vmul.f32 %v2211_v59, %v3942_v33  ;;  %v2220_v11 = vld [vmem:[%s3146_s17 + $0x58] sm:$0xff] }
 0x1c4   : > { %v2259_v0 = vmul.f32 %v2211_v59, %v3962_v51  ;;  %v1703_v40 = vsel %vm1620_vm9, %v1702_v14, %v1701_v10  ;;  %v2179_v55 = vmul.f32 %v2159_v53, %v3962_v51  ;;  %v2191_v61 = vmul.f32 %v2159_v53, %v3942_v33  ;;  %v2140_v9 = vld [vmem:[%s3138_s12 + $0x18] sm:$0xff]  ;;  %s2320_s12 = sshll.u32 %s4022_s11, 4  ;;  %s4118_s12 = int_to_ptr.vmem [resolvable:$true] %s2320_s12 }
 0x1c5   : > { %v2243_v31 = vadd.f32 %v2239_v62, %v2235_v43  ;;  %2274 = vst [vmem:[%s4022_s11 + $0x28] sm:$0xff] %v2266_v13  ;;  %v1268_v15 = vadd.s32 3, %v3947_v19  ;;  %v1706_v7 = vsel %vm4033_vm5, %v3435_v5, %v1703_v40  ;;  %2207 = vst [vmem:[%s3952_s15 + $0x50] sm:$0xff] %v2171_v25  ;;  %v2251_v3 = vmul.f32 %v2231_v28, %v3962_v51  ;;  %v2212_v59 = vld [vmem:[%s3146_s17 + $0x18] sm:$0xff] }
 0x1c6   : > { %v2263_v39 = vmul.f32 %v2231_v28, %v3942_v33  ;;  %2725 = vcosq.f32 %v1706_v7  ;;  %v2183_v23 = vsub.f32 %v4019_v45, %v2179_v55  ;;  %v2195_v47 = vadd.f32 %v2191_v61, %v2187_v58 }
 0x1c7   : > { %2279 = vst [vmem:[%s4022_s11 + $0x50] sm:$0xff] %v2243_v31  ;;  %v1707_v54 = vsel %vm4033_vm5, 0, %v4014_v49  ;;  %2727 = vsinq.f32 %v1706_v7  ;;  %v2255_v26 = vsub.f32 %v2247_v46, %v2251_v3  ;;  %v853_v37 = vand.u32 3, %v3947_v19 }
 0x1c8   : > { %v2267_v63 = vadd.f32 %v2263_v39, %v2259_v0  ;;  %2199 = vst [vmem:[%s3952_s15 + $0x10] sm:$0xff] %v2183_v23  ;;  %2203 = vst [vmem:[%s3952_s15 + $0x30] sm:$0xff] %v2195_v47  ;;  %v1269_v48 = vand.u32 3, %v1268_v15  ;;  %v856_v33 = vxor.u32 2147483648, %v4025_v57  ;;  %v859_v51 = vxor.u32 2147483648, %v4008_v30 }
 0x1c9   : > { %2271 = vst [vmem:[%s4022_s11 + $0x10] sm:$0xff] %v2255_v26  ;;  %v2126_v45 = vadd.s32 3, %v1707_v54  ;;  %vm855_vm4 = vcmp.eq.s32.totalorder %v853_v37, 0  ;;  %vm858_vm6 = vcmp.eq.s32.totalorder %v853_v37, 2  ;;  %v1711_v24 = vand.u32 3, %v1707_v54 }
 0x1ca   : > { %2275 = vst [vmem:[%s4022_s11 + $0x30] sm:$0xff] %v2267_v63  ;;  %vm1271_vm7 = vcmp.eq.s32.totalorder %v1269_v48, 0  ;;  %vm1274_vm15 = vcmp.eq.s32.totalorder %v1269_v48, 2  ;;  %v857_v49 = vsel %vm855_vm4, %v4008_v30, %v856_v33  ;;  %v860_v38 = vsel %vm858_vm6, %v859_v51, %v4025_v57 }
 0x1cb   : > { %v2127_v12 = vand.u32 3, %v2126_v45  ;;  %v1273_v19 = vsel %vm1271_vm7, %v4008_v30, %v856_v33  ;;  %v1276_v16 = vsel %vm1274_vm15, %v859_v51, %v4025_v57  ;;  %vm854_vm8 = vcmp.lt.s32.totalorder %v853_v37, 2 }
 0x1cc   : > { %v861_v6 = vsel %vm854_vm8, %v857_v49, %v860_v38  ;;  %vm1270_vm0 = vcmp.lt.s32.totalorder %v1269_v48, 2  ;;  %vm1716_vm9 = vcmp.eq.s32.totalorder %v1711_v24, 2  ;;  %vm1713_vm12 = vcmp.eq.s32.totalorder %v1711_v24, 0 }
 0x1cd   : > { %v1277_v34 = vsel %vm1270_vm0, %v1273_v19, %v1276_v16  ;;  %vm2132_vm11 = vcmp.eq.s32.totalorder %v2127_v12, 2  ;;  %vm2129_vm13 = vcmp.eq.s32.totalorder %v2127_v12, 0  ;;  %vm1712_vm10 = vcmp.lt.s32.totalorder %v1711_v24, 2 }
 0x1ce   : > { %vm2128_vm14 = vcmp.lt.s32.totalorder %v2127_v12, 2  ;;  %vm852_vm1 = vweird.f32 %v3270_v27  ;;  %vm1710_vm2 = vweird.f32 %v3435_v5 }
 0x1cf   : > { %v862_v17 = vsel %vm852_vm1, nan, %v861_v6  ;;  %v1278_v52 = vsel %vm852_vm1, nan, %v1277_v34 }
 0x1d0   : > { %v2726_v50 = vpop.eup %2725  ;;  %v2176_v14 = vmul.f32 %v2140_v9, %v862_v17  ;;  %v2188_v53 = vmul.f32 %v2140_v9, %v1278_v52  ;;  %v2248_v25 = vmul.f32 %v2212_v59, %v862_v17  ;;  %v2260_v28 = vmul.f32 %v2212_v59, %v1278_v52 }
 0x1d1   : > { %v2728_v20 = vpop.eup %2727  ;;  %v1717_v41 = vxor.u32 2147483648, %v2726_v50 }
 0x1d2   : > { %v1714_v35 = vxor.u32 2147483648, %v2728_v20 }
 0x1d3   : > { %v1718_v42 = vsel %vm1716_vm9, %v1717_v41, %v2728_v20  ;;  %v2134_v30 = vsel %vm2132_vm11, %v1717_v41, %v2728_v20 }
 0x1d4   : > { %v1715_v57 = vsel %vm1713_vm12, %v2726_v50, %v1714_v35  ;;  %v2131_v29 = vsel %vm2129_vm13, %v2726_v50, %v1714_v35 }
 0x1d5   : > { %v1719_v60 = vsel %vm1712_vm10, %v1715_v57, %v1718_v42  ;;  %v2135_v8 = vsel %vm2128_vm14, %v2131_v29, %v2134_v30 }
 0x1d6   : > { %v1720_v32 = vsel %vm1710_vm2, nan, %v1719_v60  ;;  %v2136_v58 = vsel %vm1710_vm2, nan, %v2135_v8 }
 0x1d7   : > { %v2152_v10 = vmul.f32 %v2144_v18, %v1720_v32  ;;  %v2156_v56 = vmul.f32 %v2148_v2, %v2136_v58  ;;  %v2164_v1 = vmul.f32 %v2144_v18, %v2136_v58  ;;  %v2168_v22 = vmul.f32 %v2148_v2, %v1720_v32 }
 0x1d8   : > { %v2224_v27 = vmul.f32 %v2216_v21, %v1720_v32  ;;  %v2228_v4 = vmul.f32 %v2220_v11, %v2136_v58  ;;  %v2236_v5 = vmul.f32 %v2216_v21, %v2136_v58  ;;  %v2240_v36 = vmul.f32 %v2220_v11, %v1720_v32 }
 0x1d9   : > { %v2160_v44 = vsub.f32 %v2152_v10, %v2156_v56  ;;  %v2172_v43 = vadd.f32 %v2168_v22, %v2164_v1 }
 0x1da   : > { %v2232_v62 = vsub.f32 %v2224_v27, %v2228_v4  ;;  %v2244_v13 = vadd.f32 %v2240_v36, %v2236_v5 }
 0x1db   : > { %v2180_v46 = vmul.f32 %v2160_v44, %v1278_v52  ;;  %v2192_v0 = vmul.f32 %v2160_v44, %v862_v17  ;;  %2208 = vst [vmem:[%s3952_s15 + $0x58] sm:$0xff] %v2172_v43 }
 0x1dc   : > { %v2252_v40 = vmul.f32 %v2232_v62, %v1278_v52  ;;  %v2264_v55 = vmul.f32 %v2232_v62, %v862_v17  ;;  %2280 = vst [vmem:[%s4022_s11 + $0x58] sm:$0xff] %v2244_v13 }
 0x1dd   : > { %v2184_v61 = vsub.f32 %v2176_v14, %v2180_v46  ;;  %v2196_v31 = vadd.f32 %v2192_v0, %v2188_v53 }
 0x1de   : > { %v2256_v15 = vsub.f32 %v2248_v25, %v2252_v40  ;;  %v2268_v7 = vadd.f32 %v2264_v55, %v2260_v28 }
 0x1df   : > { %2200 = vst [vmem:[%s3952_s15 + $0x18] sm:$0xff] %v2184_v61  ;;  %2204 = vst [vmem:[%s3952_s15 + $0x38] sm:$0xff] %v2196_v31 }
 0x1e0   : > { %2272 = vst [vmem:[%s4022_s11 + $0x18] sm:$0xff] %v2256_v15  ;;  %2276 = vst [vmem:[%s4022_s11 + $0x38] sm:$0xff] %v2268_v7 }
 0x1e1   : > { %2802 = shalt.err (!%p2799_p11)
}
 0x1e2   : > { %s2803_s15 = scalar_lea.hbm %s4109_s9, 1536  ;;  %s2807_s27 = scalar_lea.hbm %s4206_s6, 6144 }
 0x1e3   : > { %p2804_p4 = scmp.ne.s32.totalorder %s4109_s9, %s2803_s15  ;;  %p2808_p3 = scmp.lt.u32.totalorder %s4109_s9, %s4206_s6 }
 0x1e4   : > { %p2809_p5 = scmp.lt.u32.totalorder %s2807_s27, %s2803_s15  ;;  %p2811_p13 = scmp.lt.u32.totalorder %s2803_s15, %s4109_s9 }
 0x1e5   : > { %p2805_p10 = pnand %p2804_p4, %p4243_p2 }
 0x1e6   : > { %p2810_p8 = por %p2809_p5, %p2808_p3 }
 0x1e7   : > { %p2806_p1 = pneg %p2805_p10 }
 0x1e8   : > { %p2812_p0 = por %p2811_p13, %p2810_p8 }
 0x1ea   : > { %p2813_p12 = pnand %p2812_p0, %p2806_p1 }
 0x1ec   : > { %2816 = shalt.err (!%p2813_p12)
}
 0x1ed   : > { %s2921_s4 = smov 512   ;;  %s2922_s13 = smov 32  }
 0x1ee   : > { %2617 = dma.vmem_to_hbm [thread:$0]  (%p4243_p2), %s4111_s21, 1536, %s4109_s9, %s2282_s10, %s2921_s4, %s2921_s4, %s2922_s13  }
 0x1ef   : > { %s2287_s19 = scalar_lea.sflag [#allocation9], %s3131_s22  ;;  %s2817_s8 = scalar_lea.vmem %s4118_s12, 1536 }
 0x1f0   : > { %p2818_p6 = scmp.ne.s32.totalorder %s4118_s12, %s2817_s8  ;;  %s2923_s20 = smov [#allocation8]  }
 0x1f1   : > { %s2821_s15 = sshll.u32 %s2923_s20, 4  ;;  %s2822_s15 = int_to_ptr.vmem [resolvable:$false] %s2821_s15 }
 0x1f2   : > { %p2819_p7 = pnand %p2818_p6, %p4243_p2  ;;  %s2823_s11 = scalar_lea.vmem %s2822_s15, 3072 }
 0x1f3   : > { %p2824_p11 = scmp.lt.s32.totalorder %s4118_s12, %s2822_s15  ;;  %p2825_p4 = scmp.lt.s32.totalorder %s2823_s11, %s2817_s8 }
 0x1f4   : > { %p2820_p9 = pneg %p2819_p7 }
 0x1f5   : > { %p2826_p10 = por %p2825_p4, %p2824_p11 }
 0x1f7   : > { %p2827_p1 = pnand %p2826_p10, %p2820_p9 }
 0x1f9   : > { %2830 = shalt.err (!%p2827_p1)
}
 0x1fa   : > { %s2831_s21 = scalar_lea.hbm %s4116_s18, 1536  ;;  %s2835_s30 = scalar_lea.hbm %s4207_s7, 6144 }
 0x1fb   : > { %p2832_p3 = scmp.ne.s32.totalorder %s4116_s18, %s2831_s21  ;;  %p2836_p13 = scmp.lt.u32.totalorder %s4116_s18, %s4207_s7 }
 0x1fc   : > { %p2837_p0 = scmp.lt.u32.totalorder %s2835_s30, %s2831_s21  ;;  %p2839_p6 = scmp.lt.u32.totalorder %s2831_s21, %s4116_s18 }
 0x1fd   : > { %p2833_p5 = pnand %p2832_p3, %p4243_p2 }
 0x1fe   : > { %p2838_p12 = por %p2837_p0, %p2836_p13 }
 0x1ff   : > { %p2834_p8 = pneg %p2833_p5 }
 0x200   : > { %p2840_p7 = por %p2839_p6, %p2838_p12 }
 0x202   : > { %p2841_p9 = pnand %p2840_p7, %p2834_p8 }
 0x204   : > { %2844 = shalt.err (!%p2841_p9)
}
 0x205   : > { %2618 = dma.vmem_to_hbm [thread:$0]  (%p4243_p2), %s4118_s12, 1536, %s4116_s18, %s2287_s19, %s2921_s4, %s2921_s4, %s2922_s13  }
 0x206 PF: > { %p2636_p11 = scmp.ge.s32.totalorder %s2907_s29, 2  ;;  %s2335_s23 = sand.u32 1, %s2887_s24  }
 0x207   : > { %p4244_p4 = scmp.ne.s32.totalorder %s4219_s16, 0  ;;  %s2336_s8 = scalar_lea.sflag [#allocation4], %s2335_s23 }
 0x209   : > { %p2629_p10 = pnand %p2636_p11, %p4244_p4 }
 0x20b   : > { %2878 = dma.done.wait (!%p2629_p10), %s2336_s8, 1536  }
 0x20c   : > { %2880 = vsyncadd (!%p2629_p10), %s2336_s8, 4294965760  ;;  %s2345_s14 = scalar_lea.sflag [#allocation9], %s2335_s23 }
 0x20d   : > { %2882 = dma.done.wait (!%p2629_p10), %s2345_s14, 1536  }
 0x20e   : > { %2884 = vsyncadd (!%p2629_p10), %s2345_s14, 4294965760  ;;  %s30_s29 = sadd.s32 1, %s2907_s29   ;;  %s4245_s22 = sld [smem:[#allocation15_spill]] }
 0x20f   : > { %p27_p1 = scmp.ge.s32.totalorder %s30_s29, 6   ;;  %s4246_s12 = sld [smem:[#allocation14_spill]] }
 0x210   : > { %s4247_s24 = smov %s2891_s25  ;;  %s4248_s25 = smov %s2895_s26 }
 0x211   : > { %s4250_s27 = smov %s2903_s28  ;;  %29 = sbr.rel (!%p27_p1) target bundleno = 12 (0xc), region = 127 }
 0x214   : > { %s4249_s26 = smov %s4245_s22 }
 0x215   : > { %s4251_s28 = smov %s4246_s12 }
 0x218   :  { %2350 = vsyncpa [#allocation3], 1 }
 0x219   :  { %2352 = vsyncpa [#allocation3 + $0x1], 1 }
 0x21a   :  { %2353 = vsyncpa [#allocation6], 1 }
 0x21b   :  { %2355 = vsyncpa [#allocation6 + $0x1], 1 }
 0x21c   :  { %2356 = vsyncpa [#allocation4], 1 }
 0x21d   :  { %2358 = vsyncpa [#allocation4 + $0x1], 1 }
 0x21e   :  { %2359 = vsyncpa [#allocation9], 1 }
 0x21f   :  { %2361 = vsyncpa [#allocation9 + $0x1], 1 }

</bundles_post_ra>
